<compile_context>
chip_gen: v6e
topology: v6e:2x2x1
jax: 0.10.0
libtpu: 0.0.40
codegen_flags: <defaults>
</compile_context>

<pallas_src>
from functools import partial

import jax
import jax.numpy as jnp
from jax.experimental import pallas as pl
from jax.experimental.pallas import tpu as pltpu


def _erf(z):
    """erf via Abramowitz & Stegun 7.1.26 (max abs err ~1.5e-7 in f32).

    The divide is done with pl.reciprocal(approx=True) (EUP vrcp, ~2^-12 rel),
    keeping the VALU-bound conv/GELU phase lighter; exp also runs on the EUP.
    """
    az = jnp.abs(z)
    t = pl.reciprocal(1.0 + 0.3275911 * az, approx=True)
    poly = ((((1.061405429 * t - 1.453152027) * t + 1.421413741) * t
             - 0.284496736) * t + 0.254829592) * t
    e = 1.0 - poly * jnp.exp(-az * az)
    return jnp.where(z >= 0, e, -e)


def mlp_kernel(x_ref, w1_ref, b1_ref, wc_ref, bc_ref, w2_ref, b2_ref, o_ref,
               acc_ref, *, H, W):
    # grid = (batch, chid_chunk); one step = one hidden-dim chunk of one batch.
    c = pl.program_id(1)
    n_chunks = pl.num_programs(1)
    N = H * W

    @pl.when(c == 0)
    def _():
        acc_ref[...] = jnp.zeros_like(acc_ref)

    # ---- fc1 chunk (bf16 MXU, f32 accumulate) ---------------------------
    xb = x_ref[0].astype(jnp.bfloat16)                       # (N, C_in)
    y = jnp.dot(xb, w1_ref[...],
                preferred_element_type=jnp.float32) + b1_ref[...]  # (N, Cc) f32

    # ---- depthwise 3x3 conv, padding=1 (channels-last) ------------------
    # All spatial shifts are circular sublane rolls (XLU); image borders are
    # handled with 4 selects total:
    #   * y_l / y_r pre-mask the W (column) border once and are reused for
    #     every dh row (the mask position is W-periodic, so it survives +-W
    #     rolls unchanged).
    #   * the dh = -1 / +1 row sums are masked once with not_top / not_bot,
    #     which also kills the circular wrap of the +-W rolls.
    tok = jax.lax.broadcasted_iota(jnp.int32, (N, 1), 0)
    wcol = tok % W
    not_left = wcol != 0
    not_right = wcol != (W - 1)
    not_top = tok >= W
    not_bot = tok < (N - W)

    def roll_tok(v, shift):                                  # v[n - shift]
        return pltpu.roll(v, shift=shift % N, axis=0)

    y_l = jnp.where(not_left, roll_tok(y, 1), 0.0)           # value at (h, w-1)
    y_r = jnp.where(not_right, roll_tok(y, -1), 0.0)         # value at (h, w+1)

    wc = wc_ref[...]                                         # (9, Cc)
    mid = y_l * wc[3:4] + y * wc[4:5] + y_r * wc[5:6]
    up = (roll_tok(y_l, W) * wc[0:1] + roll_tok(y, W) * wc[1:2]
          + roll_tok(y_r, W) * wc[2:3])                      # row h-1
    dn = (roll_tok(y_l, -W) * wc[6:7] + roll_tok(y, -W) * wc[7:8]
          + roll_tok(y_r, -W) * wc[8:9])                     # row h+1
    conv = (mid + jnp.where(not_top, up, 0.0)
            + jnp.where(not_bot, dn, 0.0) + bc_ref[...])

    # ---- exact (erf) GELU, as in nn.GELU() -------------------------------
    g = 0.5 * conv * (1.0 + _erf(conv * 0.7071067811865476))

    # ---- fc2 chunk (bf16 MXU), accumulate into resident f32 scratch ------
    acc_ref[...] += jnp.dot(g.astype(jnp.bfloat16), w2_ref[...],
                            preferred_element_type=jnp.float32)

    @pl.when(c == n_chunks - 1)
    def _():
        o_ref[0] = (acc_ref[...] + b2_ref[...]).astype(o_ref.dtype)


def _pick_chid_chunk(chid, max_chunk=512):
    """Largest Chid divisor <= max_chunk that keeps the lane axis 128-aligned."""
    if chid <= max_chunk:
        return chid
    for cand in range(max_chunk, 127, -1):
        if chid % cand == 0 and cand % 128 == 0:
            return cand
    return chid  # TODO(synk): Chid with no 128-multiple divisor <= max_chunk


def mlp_forward(x, w1, b1, wconv, bconv, w2, b2, *, H, W, chid_chunk=None):
    B, N, Cin = x.shape
    assert N == H * W, "token count must equal H * W"
    assert N % 8 == 0, "token count must be sublane-aligned for the conv rolls"
    Chid = w1.shape[1]
    Cout = w2.shape[1]
    if chid_chunk is None:
        chid_chunk = _pick_chid_chunk(Chid)
    assert Chid % chid_chunk == 0
    n_chunks = Chid // chid_chunk

    # bf16 weights at the boundary: halves weight DMA/VMEM, MXU-native dtype.
    w1b = w1.astype(jnp.bfloat16)
    w2b = w2.astype(jnp.bfloat16)

    kernel = partial(mlp_kernel, H=H, W=W)
    return pl.pallas_call(
        kernel,
        out_shape=jax.ShapeDtypeStruct((B, N, Cout), x.dtype),
        grid=(B, n_chunks),
        in_specs=[
            pl.BlockSpec((1, N, Cin), lambda b, c: (b, 0, 0)),        # x (resident over c)
            pl.BlockSpec((Cin, chid_chunk), lambda b, c: (0, c)),     # w1 chunk (bf16)
            pl.BlockSpec((1, chid_chunk), lambda b, c: (0, c)),       # b1 chunk
            pl.BlockSpec((9, chid_chunk), lambda b, c: (0, c)),       # dwconv weight chunk
            pl.BlockSpec((1, chid_chunk), lambda b, c: (0, c)),       # dwconv bias chunk
            pl.BlockSpec((chid_chunk, Cout), lambda b, c: (c, 0)),    # w2 chunk (bf16)
            pl.BlockSpec((1, Cout), lambda b, c: (0, 0)),             # b2
        ],
        out_specs=pl.BlockSpec((1, N, Cout), lambda b, c: (b, 0, 0)),
        scratch_shapes=[pltpu.VMEM((N, Cout), jnp.float32)],          # fc2 accumulator
        compiler_params=pltpu.CompilerParams(
            dimension_semantics=("parallel", "arbitrary"),
            vmem_limit_bytes=56 * 1024 * 1024),
    )(x, w1b, b1, wconv, bconv, w2b, b2)


def mlp_reference(x, w1, b1, wconv, bconv, w2, b2, *, H, W):
    """Pure-JAX reference mirroring the PyTorch Mlp forward exactly (f32)."""
    B, N, Cin = x.shape
    Chid = w1.shape[1]
    hp = jax.lax.Precision.HIGHEST
    y = jnp.einsum('bnc,ch->bnh', x, w1, precision=hp) + b1[0]      # fc1
    ys = y.reshape(B, H, W, Chid)                                   # NHWC
    wk = wconv.reshape(3, 3, 1, Chid)                               # HWIO, depthwise
    conv = jax.lax.conv_general_dilated(
        ys, wk, window_strides=(1, 1), padding=((1, 1), (1, 1)),
        dimension_numbers=('NHWC', 'HWIO', 'NHWC'),
        feature_group_count=Chid, precision=hp) + bconv[0]          # DWConv
    g = jax.nn.gelu(conv, approximate=False)                        # nn.GELU (exact)
    out = jnp.einsum('bhwc,co->bhwo', g, w2, precision=hp) + b2[0]  # fc2
    return out.reshape(B, N, -1)


if __name__ == "__main__":
    B, H, W = 2, 8, 8
    N = H * W
    # Lane-dense channel counts (multiples of 128) so stores are unmasked and
    # the MXU K/N dims are filled; Chid=256 with chid_chunk=128 exercises the
    # hidden-dim accumulation path (2 chunks).
    Cin, Chid, Cout = 128, 256, 128

    key = jax.random.PRNGKey(0)
    ks = jax.random.split(key, 7)
    x = jax.random.normal(ks[0], (B, N, Cin), dtype=jnp.float32)
    w1 = jax.random.normal(ks[1], (Cin, Chid), dtype=jnp.float32) * 0.05
    b1 = jax.random.normal(ks[2], (1, Chid), dtype=jnp.float32) * 0.05
    wconv = jax.random.normal(ks[3], (9, Chid), dtype=jnp.float32) * 0.1
    bconv = jax.random.normal(ks[4], (1, Chid), dtype=jnp.float32) * 0.05
    w2 = jax.random.normal(ks[5], (Chid, Cout), dtype=jnp.float32) * 0.05
    b2 = jax.random.normal(ks[6], (1, Cout), dtype=jnp.float32) * 0.05

    out = mlp_forward(x, w1, b1, wconv, bconv, w2, b2, H=H, W=W, chid_chunk=128)
    out = jax.block_until_ready(out)

    ref = mlp_reference(x, w1, b1, wconv, bconv, w2, b2, H=H, W=W)
    assert out.shape == (B, N, Cout)
    # bf16 MXU operands -> tolerance relaxed vs the HIGHEST-precision f32 ref
    # (observed error is a few 1e-3 at these scales).
    assert jnp.allclose(out, ref, atol=3e-2, rtol=3e-2), "mismatch vs reference"

    print("KERNEL_OK")
</pallas_src>

<mosaic_0001>
module attributes {stable_mosaic.version = 11 : i64} {
  func.func @mlp_kernel(%arg0: i32, %arg1: i32, %arg2: memref<1x64x128xf32, #tpu.memory_space<vmem>>, %arg3: memref<128x128xbf16, #tpu.memory_space<vmem>>, %arg4: memref<1x128xf32, #tpu.memory_space<vmem>>, %arg5: memref<9x128xf32, #tpu.memory_space<vmem>>, %arg6: memref<1x128xf32, #tpu.memory_space<vmem>>, %arg7: memref<128x128xbf16, #tpu.memory_space<vmem>>, %arg8: memref<1x128xf32, #tpu.memory_space<vmem>>, %arg9: memref<1x64x128xf32, #tpu.memory_space<vmem>>, %arg10: memref<64x128xf32, #tpu.memory_space<vmem>>) attributes {dimension_semantics = [#tpu.dimension_semantics<parallel>, #tpu.dimension_semantics<arbitrary>], iteration_bounds = array<i64: 2, 2>, scalar_prefetch = 0 : i64, scratch_operands = 1 : i64, tpu.core_type = #tpu.core_type<tc>, window_params = [{transform_indices = @transform_0, window_bounds = array<i64: 1, 64, 128>}, {transform_indices = @transform_1, window_bounds = array<i64: 128, 128>}, {transform_indices = @transform_2, window_bounds = array<i64: 1, 128>}, {transform_indices = @transform_3, window_bounds = array<i64: 9, 128>}, {transform_indices = @transform_4, window_bounds = array<i64: 1, 128>}, {transform_indices = @transform_5, window_bounds = array<i64: 128, 128>}, {pipeline_mode = #tpu.pipeline_mode<synchronous>, transform_indices = @transform_6, window_bounds = array<i64: 1, 128>}, {transform_indices = @transform_7, window_bounds = array<i64: 1, 64, 128>}]} {
    %c0_i32 = arith.constant 0 : i32
    %0 = arith.cmpi eq, %arg1, %c0_i32 : i32
    %1 = arith.extui %0 : i1 to i32
    %c0_i32_0 = arith.constant 0 : i32
    %2 = arith.cmpi ne, %1, %c0_i32_0 : i32
    scf.if %2 {
      %cst_51 = arith.constant 0.000000e+00 : f32
      %147 = vector.broadcast %cst_51 : f32 to vector<64x128xf32>
      %c0_52 = arith.constant 0 : index
      %c0_53 = arith.constant 0 : index
      %148 = vector.load %arg10[%c0_52, %c0_53] : memref<64x128xf32, #tpu.memory_space<vmem>>, vector<64x128xf32>
      tpu.vector_store %arg10[%c0_52, %c0_53], %147 {strides = array<i32>} : memref<64x128xf32, #tpu.memory_space<vmem>>, vector<64x128xf32>,
    } else {
    }
    %c0 = arith.constant 0 : index
    %c0_1 = arith.constant 0 : index
    %c0_2 = arith.constant 0 : index
    %3 = vector.load %arg2[%c0, %c0_1, %c0_2] : memref<1x64x128xf32, #tpu.memory_space<vmem>>, vector<1x64x128xf32>
    %4 = vector.shape_cast %3 : vector<1x64x128xf32> to vector<64x128xf32>
    %5 = arith.truncf %4 : vector<64x128xf32> to vector<64x128xbf16>
    %c0_3 = arith.constant 0 : index
    %c0_4 = arith.constant 0 : index
    %6 = vector.load %arg3[%c0_3, %c0_4] : memref<128x128xbf16, #tpu.memory_space<vmem>>, vector<128x128xbf16>
    %cst = arith.constant dense<0.000000e+00> : vector<64x128xf32>
    %7 = tpu.matmul %5, %6, %cst {dimension_numbers = #tpu.dot_dimension_numbers<[1], [0], [0], [1], [0, 0, 1, 1], [], []>} : vector<64x128xbf16>, vector<128x128xbf16>, vector<64x128xf32> -> vector<64x128xf32>
    %c0_5 = arith.constant 0 : index
    %c0_6 = arith.constant 0 : index
    %8 = vector.load %arg4[%c0_5, %c0_6] : memref<1x128xf32, #tpu.memory_space<vmem>>, vector<1x128xf32>
    %9 = vector.broadcast %8 : vector<1x128xf32> to vector<64x128xf32>
    %10 = arith.addf %7, %9 : vector<64x128xf32>
    %11 = tpu.iota {dimensions = array<i32: 0>} : vector<64x1xi32>
    %c8_i32 = arith.constant 8 : i32
    %c0_i32_7 = arith.constant 0 : i32
    %12 = arith.cmpi eq, %c8_i32, %c0_i32_7 : i32
    %c1_i32 = arith.constant 1 : i32
    %13 = arith.select %12, %c1_i32, %c8_i32 : i32
    %14 = vector.broadcast %13 : i32 to vector<64x1xi32>
    %15 = arith.remsi %11, %14 : vector<64x1xi32>
    %c0_i32_8 = arith.constant 0 : i32
    %16 = vector.broadcast %c0_i32_8 : i32 to vector<64x1xi32>
    %17 = arith.cmpi ne, %15, %16 : vector<64x1xi32>
    %c0_i32_9 = arith.constant 0 : i32
    %18 = vector.broadcast %c0_i32_9 : i32 to vector<64x1xi32>
    %19 = arith.cmpi slt, %15, %18 : vector<64x1xi32>
    %c0_i32_10 = arith.constant 0 : i32
    %20 = arith.cmpi slt, %13, %c0_i32_10 : i32
    %21 = vector.broadcast %20 : i1 to vector<64x1xi1>
    %22 = vector.broadcast %21 : vector<64x1xi1> to vector<64x1xi1>
    %23 = arith.xori %19, %22 : vector<64x1xi1>
    %24 = arith.andi %23, %17 : vector<64x1xi1>
    %25 = vector.broadcast %13 : i32 to vector<64x1xi32>
    %26 = arith.addi %15, %25 : vector<64x1xi32>
    %27 = arith.select %24, %26, %15 : vector<64x1xi1>, vector<64x1xi32>
    %c0_i32_11 = arith.constant 0 : i32
    %28 = vector.broadcast %c0_i32_11 : i32 to vector<64x1xi32>
    %29 = arith.cmpi ne, %27, %28 : vector<64x1xi32>
    %c7_i32 = arith.constant 7 : i32
    %30 = vector.broadcast %c7_i32 : i32 to vector<64x1xi32>
    %31 = arith.cmpi ne, %27, %30 : vector<64x1xi32>
    %c8_i32_12 = arith.constant 8 : i32
    %32 = vector.broadcast %c8_i32_12 : i32 to vector<64x1xi32>
    %33 = arith.cmpi sge, %11, %32 : vector<64x1xi32>
    %c56_i32 = arith.constant 56 : i32
    %34 = vector.broadcast %c56_i32 : i32 to vector<64x1xi32>
    %35 = arith.cmpi slt, %11, %34 : vector<64x1xi32>
    %c1_i32_13 = arith.constant 1 : i32
    %36 = tpu.dynamic_rotate %10 by %c1_i32_13 dim 0 : vector<64x128xf32>, i32 -> vector<64x128xf32>
    %cst_14 = arith.constant 0.000000e+00 : f32
    %37 = vector.shape_cast %29 : vector<64x1xi1> to vector<64x1xi1>
    %38 = vector.broadcast %37 : vector<64x1xi1> to vector<64x128xi1>
    %39 = vector.broadcast %cst_14 : f32 to vector<64x128xf32>
    %40 = arith.select %38, %36, %39 : vector<64x128xi1>, vector<64x128xf32>
    %c63_i32 = arith.constant 63 : i32
    %41 = tpu.dynamic_rotate %10 by %c63_i32 dim 0 : vector<64x128xf32>, i32 -> vector<64x128xf32>
    %cst_15 = arith.constant 0.000000e+00 : f32
    %42 = vector.shape_cast %31 : vector<64x1xi1> to vector<64x1xi1>
    %43 = vector.broadcast %42 : vector<64x1xi1> to vector<64x128xi1>
    %44 = vector.broadcast %cst_15 : f32 to vector<64x128xf32>
    %45 = arith.select %43, %41, %44 : vector<64x128xi1>, vector<64x128xf32>
    %c0_16 = arith.constant 0 : index
    %c0_17 = arith.constant 0 : index
    %46 = vector.load %arg5[%c0_16, %c0_17] : memref<9x128xf32, #tpu.memory_space<vmem>>, vector<9x128xf32>
    %47 = vector.extract_strided_slice %46 {offsets = [3, 0], sizes = [1, 128], strides = [1, 1]} : vector<9x128xf32> to vector<1x128xf32>
    %48 = vector.broadcast %47 : vector<1x128xf32> to vector<64x128xf32>
    %49 = arith.mulf %40, %48 : vector<64x128xf32>
    %50 = vector.extract_strided_slice %46 {offsets = [4, 0], sizes = [1, 128], strides = [1, 1]} : vector<9x128xf32> to vector<1x128xf32>
    %51 = vector.broadcast %50 : vector<1x128xf32> to vector<64x128xf32>
    %52 = arith.mulf %10, %51 : vector<64x128xf32>
    %53 = arith.addf %49, %52 : vector<64x128xf32>
    %54 = vector.extract_strided_slice %46 {offsets = [5, 0], sizes = [1, 128], strides = [1, 1]} : vector<9x128xf32> to vector<1x128xf32>
    %55 = vector.broadcast %54 : vector<1x128xf32> to vector<64x128xf32>
    %56 = arith.mulf %45, %55 : vector<64x128xf32>
    %57 = arith.addf %53, %56 : vector<64x128xf32>
    %c8_i32_18 = arith.constant 8 : i32
    %58 = tpu.dynamic_rotate %40 by %c8_i32_18 dim 0 : vector<64x128xf32>, i32 -> vector<64x128xf32>
    %59 = vector.extract_strided_slice %46 {offsets = [0, 0], sizes = [1, 128], strides = [1, 1]} : vector<9x128xf32> to vector<1x128xf32>
    %60 = vector.broadcast %59 : vector<1x128xf32> to vector<64x128xf32>
    %61 = arith.mulf %58, %60 : vector<64x128xf32>
    %c8_i32_19 = arith.constant 8 : i32
    %62 = tpu.dynamic_rotate %10 by %c8_i32_19 dim 0 : vector<64x128xf32>, i32 -> vector<64x128xf32>
    %63 = vector.extract_strided_slice %46 {offsets = [1, 0], sizes = [1, 128], strides = [1, 1]} : vector<9x128xf32> to vector<1x128xf32>
    %64 = vector.broadcast %63 : vector<1x128xf32> to vector<64x128xf32>
    %65 = arith.mulf %62, %64 : vector<64x128xf32>
    %66 = arith.addf %61, %65 : vector<64x128xf32>
    %c8_i32_20 = arith.constant 8 : i32
    %67 = tpu.dynamic_rotate %45 by %c8_i32_20 dim 0 : vector<64x128xf32>, i32 -> vector<64x128xf32>
    %68 = vector.extract_strided_slice %46 {offsets = [2, 0], sizes = [1, 128], strides = [1, 1]} : vector<9x128xf32> to vector<1x128xf32>
    %69 = vector.broadcast %68 : vector<1x128xf32> to vector<64x128xf32>
    %70 = arith.mulf %67, %69 : vector<64x128xf32>
    %71 = arith.addf %66, %70 : vector<64x128xf32>
    %c56_i32_21 = arith.constant 56 : i32
    %72 = tpu.dynamic_rotate %40 by %c56_i32_21 dim 0 : vector<64x128xf32>, i32 -> vector<64x128xf32>
    %73 = vector.extract_strided_slice %46 {offsets = [6, 0], sizes = [1, 128], strides = [1, 1]} : vector<9x128xf32> to vector<1x128xf32>
    %74 = vector.broadcast %73 : vector<1x128xf32> to vector<64x128xf32>
    %75 = arith.mulf %72, %74 : vector<64x128xf32>
    %c56_i32_22 = arith.constant 56 : i32
    %76 = tpu.dynamic_rotate %10 by %c56_i32_22 dim 0 : vector<64x128xf32>, i32 -> vector<64x128xf32>
    %77 = vector.extract_strided_slice %46 {offsets = [7, 0], sizes = [1, 128], strides = [1, 1]} : vector<9x128xf32> to vector<1x128xf32>
    %78 = vector.broadcast %77 : vector<1x128xf32> to vector<64x128xf32>
    %79 = arith.mulf %76, %78 : vector<64x128xf32>
    %80 = arith.addf %75, %79 : vector<64x128xf32>
    %c56_i32_23 = arith.constant 56 : i32
    %81 = tpu.dynamic_rotate %45 by %c56_i32_23 dim 0 : vector<64x128xf32>, i32 -> vector<64x128xf32>
    %82 = vector.extract_strided_slice %46 {offsets = [8, 0], sizes = [1, 128], strides = [1, 1]} : vector<9x128xf32> to vector<1x128xf32>
    %83 = vector.broadcast %82 : vector<1x128xf32> to vector<64x128xf32>
    %84 = arith.mulf %81, %83 : vector<64x128xf32>
    %85 = arith.addf %80, %84 : vector<64x128xf32>
    %cst_24 = arith.constant 0.000000e+00 : f32
    %86 = vector.shape_cast %33 : vector<64x1xi1> to vector<64x1xi1>
    %87 = vector.broadcast %86 : vector<64x1xi1> to vector<64x128xi1>
    %88 = vector.broadcast %cst_24 : f32 to vector<64x128xf32>
    %89 = arith.select %87, %71, %88 : vector<64x128xi1>, vector<64x128xf32>
    %90 = arith.addf %57, %89 : vector<64x128xf32>
    %cst_25 = arith.constant 0.000000e+00 : f32
    %91 = vector.shape_cast %35 : vector<64x1xi1> to vector<64x1xi1>
    %92 = vector.broadcast %91 : vector<64x1xi1> to vector<64x128xi1>
    %93 = vector.broadcast %cst_25 : f32 to vector<64x128xf32>
    %94 = arith.select %92, %85, %93 : vector<64x128xi1>, vector<64x128xf32>
    %95 = arith.addf %90, %94 : vector<64x128xf32>
    %c0_26 = arith.constant 0 : index
    %c0_27 = arith.constant 0 : index
    %96 = vector.load %arg6[%c0_26, %c0_27] : memref<1x128xf32, #tpu.memory_space<vmem>>, vector<1x128xf32>
    %97 = vector.broadcast %96 : vector<1x128xf32> to vector<64x128xf32>
    %98 = arith.addf %95, %97 : vector<64x128xf32>
    %cst_28 = arith.constant 5.000000e-01 : f32
    %99 = vector.broadcast %cst_28 : f32 to vector<64x128xf32>
    %100 = arith.mulf %99, %98 : vector<64x128xf32>
    %cst_29 = arith.constant 0.707106769 : f32
    %101 = vector.broadcast %cst_29 : f32 to vector<64x128xf32>
    %102 = arith.mulf %98, %101 : vector<64x128xf32>
    %103 = math.absf %102 : vector<64x128xf32>
    %cst_30 = arith.constant 0.327591091 : f32
    %104 = vector.broadcast %cst_30 : f32 to vector<64x128xf32>
    %105 = arith.mulf %104, %103 : vector<64x128xf32>
    %cst_31 = arith.constant 1.000000e+00 : f32
    %106 = vector.broadcast %cst_31 : f32 to vector<64x128xf32>
    %107 = arith.addf %106, %105 : vector<64x128xf32>
    %108 = tpu.reciprocal %107 {approx = true} : vector<64x128xf32> -> vector<64x128xf32>
    %cst_32 = arith.constant 1.06140542 : f32
    %109 = vector.broadcast %cst_32 : f32 to vector<64x128xf32>
    %110 = arith.mulf %109, %108 : vector<64x128xf32>
    %cst_33 = arith.constant 1.45315206 : f32
    %111 = vector.broadcast %cst_33 : f32 to vector<64x128xf32>
    %112 = arith.subf %110, %111 : vector<64x128xf32>
    %113 = arith.mulf %112, %108 : vector<64x128xf32>
    %cst_34 = arith.constant 1.42141378 : f32
    %114 = vector.broadcast %cst_34 : f32 to vector<64x128xf32>
    %115 = arith.addf %113, %114 : vector<64x128xf32>
    %116 = arith.mulf %115, %108 : vector<64x128xf32>
    %cst_35 = arith.constant 0.284496725 : f32
    %117 = vector.broadcast %cst_35 : f32 to vector<64x128xf32>
    %118 = arith.subf %116, %117 : vector<64x128xf32>
    %119 = arith.mulf %118, %108 : vector<64x128xf32>
    %cst_36 = arith.constant 0.254829586 : f32
    %120 = vector.broadcast %cst_36 : f32 to vector<64x128xf32>
    %121 = arith.addf %119, %120 : vector<64x128xf32>
    %122 = arith.mulf %121, %108 : vector<64x128xf32>
    %cst_37 = arith.constant 0.000000e+00 : f32
    %123 = vector.broadcast %cst_37 : f32 to vector<64x128xf32>
    %124 = arith.subf %123, %103 : vector<64x128xf32>
    %125 = arith.mulf %124, %103 : vector<64x128xf32>
    %126 = math.exp %125 : vector<64x128xf32>
    %127 = arith.mulf %122, %126 : vector<64x128xf32>
    %cst_38 = arith.constant 1.000000e+00 : f32
    %128 = vector.broadcast %cst_38 : f32 to vector<64x128xf32>
    %129 = arith.subf %128, %127 : vector<64x128xf32>
    %cst_39 = arith.constant 0.000000e+00 : f32
    %130 = vector.broadcast %cst_39 : f32 to vector<64x128xf32>
    %131 = arith.cmpf oge, %102, %130 : vector<64x128xf32>
    %cst_40 = arith.constant 0.000000e+00 : f32
    %132 = vector.broadcast %cst_40 : f32 to vector<64x128xf32>
    %133 = arith.subf %132, %129 : vector<64x128xf32>
    %134 = arith.select %131, %129, %133 : vector<64x128xi1>, vector<64x128xf32>
    %cst_41 = arith.constant 1.000000e+00 : f32
    %135 = vector.broadcast %cst_41 : f32 to vector<64x128xf32>
    %136 = arith.addf %135, %134 : vector<64x128xf32>
    %137 = arith.mulf %100, %136 : vector<64x128xf32>
    %c0_42 = arith.constant 0 : index
    %c0_43 = arith.constant 0 : index
    %138 = vector.load %arg10[%c0_42, %c0_43] : memref<64x128xf32, #tpu.memory_space<vmem>>, vector<64x128xf32>
    %139 = arith.truncf %137 : vector<64x128xf32> to vector<64x128xbf16>
    %c0_44 = arith.constant 0 : index
    %c0_45 = arith.constant 0 : index
    %140 = vector.load %arg7[%c0_44, %c0_45] : memref<128x128xbf16, #tpu.memory_space<vmem>>, vector<128x128xbf16>
    %cst_46 = arith.constant dense<0.000000e+00> : vector<64x128xf32>
    %141 = tpu.matmul %139, %140, %cst_46 {dimension_numbers = #tpu.dot_dimension_numbers<[1], [0], [0], [1], [0, 0, 1, 1], [], []>} : vector<64x128xbf16>, vector<128x128xbf16>, vector<64x128xf32> -> vector<64x128xf32>
    %142 = arith.addf %138, %141 : vector<64x128xf32>
    %c0_47 = arith.constant 0 : index
    %c0_48 = arith.constant 0 : index
    %143 = vector.load %arg10[%c0_47, %c0_48] : memref<64x128xf32, #tpu.memory_space<vmem>>, vector<64x128xf32>
    tpu.vector_store %arg10[%c0_47, %c0_48], %142 {strides = array<i32>} : memref<64x128xf32, #tpu.memory_space<vmem>>, vector<64x128xf32>,
    %c1_i32_49 = arith.constant 1 : i32
    %144 = arith.cmpi eq, %arg1, %c1_i32_49 : i32
    %145 = arith.extui %144 : i1 to i32
    %c0_i32_50 = arith.constant 0 : i32
    %146 = arith.cmpi ne, %145, %c0_i32_50 : i32
    scf.if %146 {
      %c0_51 = arith.constant 0 : index
      %c0_52 = arith.constant 0 : index
      %147 = vector.load %arg10[%c0_51, %c0_52] : memref<64x128xf32, #tpu.memory_space<vmem>>, vector<64x128xf32>
      %c0_53 = arith.constant 0 : index
      %c0_54 = arith.constant 0 : index
      %148 = vector.load %arg8[%c0_53, %c0_54] : memref<1x128xf32, #tpu.memory_space<vmem>>, vector<1x128xf32>
      %149 = vector.broadcast %148 : vector<1x128xf32> to vector<64x128xf32>
      %150 = arith.addf %147, %149 : vector<64x128xf32>
      %c0_55 = arith.constant 0 : index
      %c0_56 = arith.constant 0 : index
      %c0_57 = arith.constant 0 : index
      %151 = vector.load %arg9[%c0_55, %c0_56, %c0_57] : memref<1x64x128xf32, #tpu.memory_space<vmem>>, vector<1x64x128xf32>
      %152 = vector.shape_cast %151 : vector<1x64x128xf32> to vector<64x128xf32>
      %153 = vector.shape_cast %150 : vector<64x128xf32> to vector<1x64x128xf32>
      tpu.vector_store %arg9[%c0_55, %c0_56, %c0_57], %153 {strides = array<i32>} : memref<1x64x128xf32, #tpu.memory_space<vmem>>, vector<1x64x128xf32>,
    } else {
    }
    return
  }
  func.func @transform_0(%arg0: i32, %arg1: i32) -> (i32, i32, i32) {
    %c0_i32 = arith.constant 0 : i32
    %c0_i32_0 = arith.constant 0 : i32
    %c0_i32_1 = arith.constant 0 : i32
    return %arg0, %c0_i32, %c0_i32_0 : i32, i32, i32
  }
  func.func @transform_1(%arg0: i32, %arg1: i32) -> (i32, i32) {
    %c0_i32 = arith.constant 0 : i32
    %c0_i32_0 = arith.constant 0 : i32
    return %c0_i32, %arg1 : i32, i32
  }
  func.func @transform_2(%arg0: i32, %arg1: i32) -> (i32, i32) {
    %c0_i32 = arith.constant 0 : i32
    %c0_i32_0 = arith.constant 0 : i32
    return %c0_i32, %arg1 : i32, i32
  }
  func.func @transform_3(%arg0: i32, %arg1: i32) -> (i32, i32) {
    %c0_i32 = arith.constant 0 : i32
    %c0_i32_0 = arith.constant 0 : i32
    return %c0_i32, %arg1 : i32, i32
  }
  func.func @transform_4(%arg0: i32, %arg1: i32) -> (i32, i32) {
    %c0_i32 = arith.constant 0 : i32
    %c0_i32_0 = arith.constant 0 : i32
    return %c0_i32, %arg1 : i32, i32
  }
  func.func @transform_5(%arg0: i32, %arg1: i32) -> (i32, i32) {
    %c0_i32 = arith.constant 0 : i32
    %c0_i32_0 = arith.constant 0 : i32
    return %arg1, %c0_i32 : i32, i32
  }
  func.func @transform_6(%arg0: i32, %arg1: i32) -> (i32, i32) {
    %c0_i32 = arith.constant 0 : i32
    %c0_i32_0 = arith.constant 0 : i32
    %c0_i32_1 = arith.constant 0 : i32
    return %c0_i32, %c0_i32_0 : i32, i32
  }
  func.func @transform_7(%arg0: i32, %arg1: i32) -> (i32, i32, i32) {
    %c0_i32 = arith.constant 0 : i32
    %c0_i32_0 = arith.constant 0 : i32
    %c0_i32_1 = arith.constant 0 : i32
    return %arg0, %c0_i32, %c0_i32_0 : i32, i32, i32
  }
}

</mosaic_0001>

<bundles_post_ra>
// kernel: tpu_custom_call.1
= control target key start
LH: loop header
LB: loop body
LE: loop exit
PB: predicated region body
PF: predicated region fallthrough
CT: control target
= control target key end

     0   :  { %s3204_s0 = inlined_call_operand.hbm [shape: f32[2,64,128], index: 0, kind: input, shape index: {}]   ;;  %s3205_s1 = inlined_call_operand.hbm [shape: bf16[128,256], index: 1, kind: input, shape index: {}]   ;;  %s3206_s2 = inlined_call_operand.vmem [shape: f32[1,256], index: 2, kind: input, shape index: {}]   ;;  %s3207_s3 = inlined_call_operand.hbm [shape: f32[9,256], index: 3, kind: input, shape index: {}]   ;;  %s3208_s4 = inlined_call_operand.vmem [shape: f32[1,256], index: 4, kind: input, shape index: {}]   ;;  %s3209_s5 = inlined_call_operand.hbm [shape: bf16[256,128], index: 5, kind: input, shape index: {}]   ;;  %s3210_s6 = inlined_call_operand.vmem [shape: f32[1,128], index: 6, kind: input, shape index: {}]   ;;  %s3211_s7 = inlined_call_operand.hbm [shape: f32[2,64,128], index: 7, kind: output, shape index: {}]  }
   0x1   :  { %3234 = sst [smem:[#allocation27_spill]] %s3204_s0 }
   0x2   :  { %3235 = sst [smem:[#allocation28_spill]] %s3205_s1 }
   0x3   :  { %3236 = sst [smem:[#allocation29_spill]] %s3206_s2 }
   0x4   :  { %3237 = sst [smem:[#allocation30_spill]] %s3208_s4 }
   0x5   :  { %3238 = sst [smem:[#allocation31_spill]] %s3210_s6 }
   0x6   :  { %3239 = sst [smem:[#allocation32_spill]] %s3211_s7 }
   0x7   :  { %12 = vsyncpa [#allocation4], 0 }
   0x8   :  { %14 = vsyncpa [#allocation4 + $0x1], 0 }
   0x9   :  { %15 = vsyncpa [#allocation7], 0 }
   0xa   :  { %17 = vsyncpa [#allocation7 + $0x1], 0 }
   0xb   :  { %18 = vsyncpa [#allocation10], 0 }
   0xc   :  { %20 = vsyncpa [#allocation10 + $0x1], 0 }
   0xd   :  { %21 = vsyncpa [#allocation5], 0 }
   0xe   :  { %23 = vsyncpa [#allocation5 + $0x1], 0  ;;  %s2258_s24 = smov 0   ;;  %s2260_s25 = smov 0  }
   0xf   :  { %s2262_s26 = smov 0   ;;  %s2264_s27 = smov 0  }
  0x10   :  { %s2266_s28 = smov 0   ;;  %s2268_s29 = smov 0  }
  0x11   :  { %s2270_s30 = smov 0   ;;  %s2272_s8 = smov 0  }
  0x12   :  { %s2274_s9 = smov 0   ;;  %s2276_s10 = smov 0  }
  0x13   :  { %s2278_s11 = smov 0  }
  0x14 LB: > { %3240 = sst [smem:[#allocation16_spill]] %s2171_s26  ;;  %p56_p0 = scmp.eq.s32.totalorder %s2203_s11, 0  ;;  %s2203_s11 = sphi %s2278_s11, %s29_s11   ;;  %s2199_s10 = sphi %s2276_s10, %s3327_s10   ;;  %s2195_s9 = sphi %s2274_s9, %s3333_s9   ;;  %s2191_s8 = sphi %s2272_s8, %s3325_s8   ;;  %s2187_s30 = sphi %s2270_s30, %s3332_s30   ;;  %s2183_s29 = sphi %s2268_s29, %s3324_s29   ;;  %s2179_s28 = sphi %s2266_s28, %s3331_s28   ;;  %s2175_s27 = sphi %s2264_s27, %s3330_s27   ;;  %s2171_s26 = sphi %s2262_s26, %s3322_s26   ;;  %s2167_s25 = sphi %s2260_s25, %s3329_s25   ;;  %s2163_s24 = sphi %s2258_s24, %s3328_s24  }
  0x15   : > { %3241 = sst [smem:[#allocation17_spill]] %s2175_s27  ;;  %p81_p1 = scmp.ne.s32.totalorder %s2171_s26, %s2167_s25 }
  0x16   : > { %3242 = sst [smem:[#allocation18_spill]] %s2183_s29  ;;  %p87_p2 = scmp.ne.s32.totalorder %s2167_s25, %s2163_s24 }
  0x17   : > { %3243 = sst [smem:[#allocation19_spill]] %s2191_s8  ;;  %p3219_p3 = scmp.lt.s32.totalorder %s2203_s11, 4 }
  0x18   : > { %3244 = sst [smem:[#allocation20_spill]] %s2199_s10  ;;  %p83_p4 = por %p81_p1, %p56_p0 }
  0x19   : > { %s286_s13 = sand.u32 1, %s2203_s11   ;;  %s2324_s14 = sand.u32 1, %s2171_s26  }
  0x1a   : > { %s3212_s15 = sshll.u32 %s2324_s14, 6  ;;  %s1660_s16 = sshll.u32 %s2195_s9, 6 }
  0x1b   : > { %s3245_s1 = sld [smem:[#allocation28_spill]]  ;;  %s290_s20 = scalar_lea.vmem [#allocation6], %s3212_s15 }
  0x1c   : > { %s296_s21 = sshll.u32 %s290_s20, 4  ;;  %p2335_p5 = pnand %p3219_p3, %p83_p4  ;;  %s297_s21 = int_to_ptr.vmem [resolvable:$true] %s296_s21 }
  0x1d   : > { %p1666_p6 = scmp.ge.s32.totalorder %s2203_s11, 1  ;;  %s2340_s23 = scalar_lea.sflag [#allocation7], %s286_s13 }
  0x1e   : > { %p3218_p7 = pneg %p2335_p5  ;;  %s1976_s12 = scalar_lea.vmem %s297_s21, 1024 }
  0x1f   : > { %p1977_p8 = scmp.ne.s32.totalorder %s297_s21, %s1976_s12 }
  0x21   : > { %s295_s19 = scalar_lea.hbm %s3245_s1, %s1660_s16  ;;  %p1979_p9 = pnand %p1977_p8, %p3218_p7 }
  0x22   : > { %s2205_s16 = smov [#allocation6]  }
  0x23   : > { %p1980_p10 = pneg %p1979_p9  ;;  %s1981_s17 = sshll.u32 %s2205_s16, 4  ;;  %s1982_s17 = int_to_ptr.vmem [resolvable:$false] %s1981_s17 }
  0x24   : > { %s1983_s18 = scalar_lea.vmem %s1982_s17, 2048  ;;  %p1984_p11 = scmp.lt.s32.totalorder %s297_s21, %s1982_s17 }
  0x25   : > { %p1985_p12 = scmp.lt.s32.totalorder %s1983_s18, %s1976_s12 }
  0x27   : > { %p1986_p13 = por %p1985_p12, %p1984_p11 }
  0x29   : > { %p1987_p1 = pnand %p1986_p13, %p1980_p10 }
  0x2b   : > { %1990 = shalt.err (!%p1987_p1)
}
  0x2c   : > { %s3215_s20 = smov 128   ;;  %s3213_s12 = smov 64  }
  0x2d   : > { %s3214_s13 = smov 4   ;;  %p357_p4 = scmp.lt.s32.totalorder %s2203_s11, 5 }
  0x2e   : > { %1806 = dma.hbm_to_vmem [thread:$0]  (!%p2335_p5), %s295_s19, 1024, %s297_s21, %s2340_s23, %s3215_s20, %s3213_s12, %s3214_s13  }
  0x2f   : > { %p2356_p8 = pnand %p1666_p6, %p357_p4  ;;  %s2361_s17 = sadd.s32 4294967295, %s2203_s11  }
  0x30   : > { %s1653_s18 = sadd.s32 4294967294, %s2203_s11   ;;  %s38_s15 = sadd.s32 1, %s2195_s9 }
  0x31   : > { %s41_s1 = sadd.s32 1, %s2199_s10  ;;  %p39_p9 = scmp.ge.s32.totalorder %s38_s15, 2 }
  0x32   : > { %s48_s19 = sadd.s32 1, %s2183_s29  ;;  %p55_p10 = scmp.ne.s32.totalorder %s2183_s29, %s2179_s28 }
  0x33   : > { %p61_p11 = scmp.ne.s32.totalorder %s2179_s28, %s2175_s27  ;;  %s3335_s15 = smov (%p39_p9, %s38_s15), 0 }
  0x34   : > { %3248 = sst [smem:[#allocation21_spill]] %s3335_s15  ;;  %s3337_s1 = smov (!%p39_p9, %s41_s1), %s2199_s10 }
  0x35   : > { %p2379_p6 = por %p56_p0, %p55_p10  ;;  %p62_p12 = scmp.eq.s32.totalorder %s2361_s17, 0 }
  0x36   : > { %p43_p13 = scmp.ge.s32.totalorder %s3337_s1, 2  ;;  %s71_s12 = ssub.s32 %s2195_s9, %s3335_s15 }
  0x37   : > { %p2389_p1 = por %p62_p12, %p61_p11  ;;  %p72_p4 = scmp.eq.s32.totalorder %s71_s12, 0 }
  0x38   : > { %s3339_s1 = smov (%p43_p13, %s3337_s1), 0  ;;  %s3252_s20 = sadd.s32 1, %s2171_s26 }
  0x39   : > { %3251 = sst [smem:[#allocation22_spill]] %s3339_s1  ;;  %s45_s8 = ssub.s32 %s2199_s10, %s3339_s1 }
  0x3a   : > { %s2398_s7 = scalar_select %p72_p4, %s2171_s26, %s3252_s20  }
  0x3b   : > { %p2405_p0 = por %p87_p2, %p62_p12  ;;  %p46_p9 = scmp.eq.s32.totalorder %s45_s8, 0 }
  0x3c   : > { %3253 = sst [smem:[#allocation23_spill]] %s2398_s7  ;;  %p236_p7 = scmp.eq.s32.totalorder %s2361_s17, 3 }
  0x3d   : > { %p242_p3 = scmp.eq.s32.totalorder %s1653_s18, 3  ;;  %s265_s15 = sand.u32 1, %s2183_s29  }
  0x3e   : > { %s2412_s12 = scalar_select %p46_p9, %s2183_s29, %s48_s19  }
  0x3f   : > { %p2417_p13 = por %p236_p7, %p55_p10  ;;  %p2424_p4 = por %p242_p3, %p61_p11 }
  0x40   : > { %3255 = sst [smem:[#allocation24_spill]] %s2412_s12  ;;  %s1656_s24 = sshll.u32 %s265_s15, 6 }
  0x41   : > { %s3256_s4 = scalar_select %p2417_p13, 1, 0 }
  0x42   : > { %s3257_s20 = scalar_select %p2424_p4, 1, 0 }
  0x43   : > { %s1715_s1 = sshll.u32 %s2199_s10, 10  ;;  %s3259_s0 = sld [smem:[#allocation27_spill]] }
  0x44   : > { %3258 = sst [smem:[#allocation25_spill]] %s3257_s20  ;;  %s269_s18 = scalar_lea.vmem [#allocation3], %s1656_s24 }
  0x45   : > { %s276_s2 = sshll.u32 %s269_s18, 4  ;;  %p3260_p2 = scmp.lt.s32.totalorder %s2203_s11, 4  ;;  %s277_s2 = int_to_ptr.vmem [resolvable:$true] %s276_s2 }
  0x46   : > { %s1661_s12 = sshll.u32 %s2324_s14, 4  ;;  %s266_s29 = scalar_lea.sflag [#allocation4], %s265_s15 }
  0x47   : > { %p2436_p7 = pnand %p3260_p2, %p2379_p6  ;;  %s2004_s20 = scalar_lea.vmem %s277_s2, 1024 }
  0x48   : > { %p2005_p10 = scmp.ne.s32.totalorder %s277_s2, %s2004_s20  ;;  %s2209_s7 = smov [#allocation3]  }
  0x49   : > { %s275_s8 = scalar_lea.hbm %s3259_s0, %s1715_s1  ;;  %p1993_p3 = pneg %p2436_p7 }
  0x4a   : > { %s2009_s1 = sshll.u32 %s2209_s7, 4  ;;  %s2010_s1 = int_to_ptr.vmem [resolvable:$false] %s2009_s1 }
  0x4b   : > { %p2007_p11 = pnand %p2005_p10, %p1993_p3  ;;  %s2011_s26 = scalar_lea.vmem %s2010_s1, 2048 }
  0x4c   : > { %p2012_p9 = scmp.lt.s32.totalorder %s277_s2, %s2010_s1  ;;  %p2013_p4 = scmp.lt.s32.totalorder %s2011_s26, %s2004_s20 }
  0x4d   : > { %p2008_p12 = pneg %p2007_p11 }
  0x4e   : > { %p2014_p13 = por %p2013_p4, %p2012_p9 }
  0x50   : > { %p2015_p6 = pnand %p2014_p13, %p2008_p12 }
  0x52   : > { %2018 = shalt.err (!%p2015_p6)
}
  0x53   : > { %s2210_s21 = smov 8   ;;  %s3262_s24 = smov 128  }
  0x54   : > { %1803 = dma.hbm_to_vmem [thread:$0]  (!%p2436_p7), %s275_s8, 1024, %s277_s2, %s266_s29, %s3262_s24, %s3262_s24, %s2210_s21  }
  0x55   : > { %s1662_s15 = sshll.u32 %s2195_s9, 7  ;;  %s316_s18 = scalar_lea.vmem [#allocation8], %s1661_s12 }
  0x56   : > { %s322_s0 = sshll.u32 %s316_s18, 4  ;;  %s321_s27 = scalar_lea.hbm %s3207_s3, %s1662_s15  ;;  %s323_s0 = int_to_ptr.vmem [resolvable:$true] %s322_s0 }
  0x57   : > { %s2032_s20 = scalar_lea.vmem %s323_s0, 256  ;;  %p3263_p13 = pneg %p2335_p5 }
  0x58   : > { %p2033_p4 = scmp.ne.s32.totalorder %s323_s0, %s2032_s20  ;;  %s2211_s19 = smov [#allocation8]  }
  0x59   : > { %s2037_s1 = sshll.u32 %s2211_s19, 4  ;;  %s2038_s1 = int_to_ptr.vmem [resolvable:$false] %s2037_s1 }
  0x5a   : > { %p2035_p2 = pnand %p2033_p4, %p3263_p13  ;;  %s2039_s26 = scalar_lea.vmem %s2038_s1, 512 }
  0x5b   : > { %p2040_p10 = scmp.lt.s32.totalorder %s323_s0, %s2038_s1  ;;  %p2041_p7 = scmp.lt.s32.totalorder %s2039_s26, %s2032_s20 }
  0x5c   : > { %p2036_p3 = pneg %p2035_p2 }
  0x5d   : > { %p2042_p11 = por %p2041_p7, %p2040_p10 }
  0x5f   : > { %p2043_p12 = pnand %p2042_p11, %p2036_p3 }
  0x61   : > { %2046 = shalt.err (!%p2043_p12)
}
  0x62   : > { %s2212_s2 = smov 256   ;;  %s1716_s29 = sshll.u32 %s2195_s9, 10 }
  0x63   : > { %1809 = dma.hbm_to_vmem [thread:$0]  (!%p2335_p5), %s321_s27, 256, %s323_s0, %s2340_s23, %s2212_s2, %s3262_s24, %s2210_s21  }
  0x64   : > { %s348_s8 = scalar_lea.hbm %s3209_s5, %s1716_s29  ;;  %s3264_s15 = sshll.u32 %s2324_s14, 6 }
  0x65   : > { %s342_s18 = scalar_lea.vmem [#allocation9], %s3264_s15  ;;  %s339_s20 = scalar_lea.sflag [#allocation10], %s2324_s14 }
  0x66   : > { %s349_s7 = sshll.u32 %s342_s18, 4  ;;  %p3265_p6 = pmov %p3263_p13  ;;  %s350_s7 = int_to_ptr.vmem [resolvable:$true] %s349_s7 }
  0x67   : > { %s2060_s19 = scalar_lea.vmem %s350_s7, 1024  ;;  %s2213_s1 = smov [#allocation9]  }
  0x68   : > { %p2061_p9 = scmp.ne.s32.totalorder %s350_s7, %s2060_s19  ;;  %s2065_s26 = sshll.u32 %s2213_s1, 4  ;;  %s2066_s26 = int_to_ptr.vmem [resolvable:$false] %s2065_s26 }
  0x69   : > { %s2067_s0 = scalar_lea.vmem %s2066_s26, 2048  ;;  %p2068_p2 = scmp.lt.s32.totalorder %s350_s7, %s2066_s26 }
  0x6a   : > { %p2063_p4 = pnand %p2061_p9, %p3265_p6  ;;  %p2069_p3 = scmp.lt.s32.totalorder %s2067_s0, %s2060_s19 }
  0x6c   : > { %p2064_p13 = pneg %p2063_p4  ;;  %p2070_p10 = por %p2069_p3, %p2068_p2 }
  0x6e   : > { %p2071_p7 = pnand %p2070_p10, %p2064_p13 }
  0x70   : > { %2074 = shalt.err (!%p2071_p7)
}
  0x71   : > { %s3266_s27 = smov 4   ;;  %s3267_s23 = smov 64  }
  0x72   : > { %1812 = dma.hbm_to_vmem [thread:$0]  (!%p2335_p5), %s348_s8, 1024, %s350_s7, %s339_s20, %s3267_s23, %s3267_s23, %s3266_s27  }
  0x73   : > { %361 = sbr.rel (%p2356_p8) target bundleno = 731 (0x2db), region = 48 }
  0x78   : > { %s2476_s14 = sand.u32 1, %s2179_s28  }
  0x79   : > { %s1667_s21 = sshll.u32 %s2476_s14, 6  ;;  %s364_s24 = scalar_lea.sflag [#allocation4], %s2476_s14 }
  0x7a   : > { %s2480_s2 = scalar_lea.vmem [#allocation3], %s1667_s21 }
  0x7b   : > { %2146 = dma.done.wait (%p2389_p1), %s364_s24, 1024  }
  0x7c   : > { %2148 = vsyncadd (%p2389_p1), %s364_s24, 4294966272  ;;  %s372_s22 = sand.u32 1, %s2361_s17   ;;  %s374_s16 = sand.u32 1, %s2167_s25  }
  0x7d   : > { %s1668_s29 = sshll.u32 %s374_s16, 6  ;;  %s373_s10 = scalar_lea.sflag [#allocation7], %s372_s22 }
  0x7e   : > { %s2488_s12 = scalar_lea.vmem [#allocation6], %s1668_s29 }
  0x7f   : > { %2150 = dma.done.wait (%p2405_p0), %s373_s10, 1280  }
  0x80   : > { %2152 = vsyncadd (%p2405_p0), %s373_s10, 4294966016  ;;  %s1669_s8 = sshll.u32 %s374_s16, 4  ;;  %s391_s13 = scalar_lea.sflag [#allocation10], %s374_s16 }
  0x81   : > { %s2494_s15 = scalar_lea.vmem [#allocation8], %s1669_s8  ;;  %s2496_s18 = scalar_lea.vmem [#allocation9], %s1668_s29 }
  0x82   : > { %2154 = dma.done.wait (%p2405_p0), %s391_s13, 1024  }
  0x83   : > { %2156 = vsyncadd (%p2405_p0), %s391_s13, 4294966272  ;;  %p446_p5 = scmp.lt.s32.totalorder %s2187_s30, 1  ;;  %s3268_s19 = sld [smem:[#allocation29_spill]] }
  0x84   : > { %s3269_s27 = sld [smem:[#allocation30_spill]]  ;;  %s2514_s24 = scalar_lea.vmem [#allocation11], %s1667_s21 }
  0x85   : > { %s2504_s17 = scalar_select %p446_p5, %s2187_s30, 1 }
  0x86   : > { %p1672_p8 = scmp.ne.s32.totalorder %s2187_s30, 0 }
  0x88   : > { %457 = sbr.rel (%p1672_p8) target bundleno = 146 (0x92), region = 68 }
  0x89   : > { %s448_s1 = scalar_lea.vmem %s3268_s19, %s2504_s17 }
  0x8a   : > { %s451_s23 = scalar_lea.vmem %s3269_s27, %s2504_s17 }
  0x8d   : > { %v2214_v0 = vmov 0.0  }
  0x8e   : > { %458 = vst [vmem:[#allocation2 + $0x30] sm:$0xff] %v2214_v0  ;;  %459 = vst [vmem:[#allocation2] sm:$0xff] %v2214_v0 }
  0x8f   : > { %460 = vst [vmem:[#allocation2 + $0x18] sm:$0xff] %v2214_v0  ;;  %461 = vst [vmem:[#allocation2 + $0x10] sm:$0xff] %v2214_v0 }
  0x90   : > { %462 = vst [vmem:[#allocation2 + $0x8] sm:$0xff] %v2214_v0  ;;  %463 = vst [vmem:[#allocation2 + $0x20] sm:$0xff] %v2214_v0 }
  0x91   : > { %464 = vst [vmem:[#allocation2 + $0x28] sm:$0xff] %v2214_v0  ;;  %465 = vst [vmem:[#allocation2 + $0x38] sm:$0xff] %v2214_v0 }
  0x92 PF: > { %v1915_v1 = vld [vmem:[%s2488_s12 + $0x38] sm:$0xff]   ;;  %v1916_v2 = vld [vmem:[%s2488_s12 + $0x30] sm:$0xff]   ;;  %v1917_v3 = vld [vmem:[%s2488_s12 + $0x28] sm:$0xff]   ;;  %v614_v29 = vlaneseq  ;;  %p1708_p1 = scmp.ne.s32.totalorder %s2187_s30, 1 }
  0x93   : > { %1742 = vmatprep.subr.bf16.mxu0 %v1915_v1  ;;  %v1918_v4 = vld [vmem:[%s2488_s12 + $0x20] sm:$0xff]   ;;  %v467_v6 = vld [vmem:[%s2480_s2 + $0x8] sm:$0xff]  ;;  %v1919_v8 = vld [vmem:[%s2488_s12 + $0x18] sm:$0xff]   ;;  %s3314_s8 = sld [smem:[#allocation31_spill]] (!%p1708_p1) }
  0x94   : > { %1743 = vmatpush3.bf16.msra.mxu0 %v1915_v1  ;;  %v466_v5 = vld [vmem:[%s2480_s2] sm:$0xff]  ;;  %v1920_v9 = vld [vmem:[%s2488_s12 + $0x10] sm:$0xff]   ;;  %v1921_v10 = vld [vmem:[%s2488_s12 + $0x8] sm:$0xff]   ;;  %v2541_v30 = vshrl.u32 %v614_v29, 7 }
  0x95   : > { %1744 = vmatprep.subr.bf16.mxu0 %v1916_v2  ;;  %v474_v7 = vpack.c.bf16 %v467_v6, %v466_v5  ;;  %v1922_v11 = vld [vmem:[%s2488_s12] sm:$0xff]   ;;  %v468_v12 = vld [vmem:[%s2480_s2 + $0x10] sm:$0xff]  ;;  %v469_v13 = vld [vmem:[%s2480_s2 + $0x18] sm:$0xff] }
  0x96   : > { %v470_v14 = vld [vmem:[%s2480_s2 + $0x20] sm:$0xff]  ;;  %v471_v15 = vld [vmem:[%s2480_s2 + $0x28] sm:$0xff]  ;;  %v475_v16 = vpack.c.bf16 %v469_v13, %v468_v12  ;;  %v472_v18 = vld [vmem:[%s2480_s2 + $0x30] sm:$0xff]  ;;  %v2544_v31 = vadd.s32 24, %v2541_v30  ;;  %v849_v32 = vsub.s32 4, %v2541_v30  ;;  %v901_v33 = vsub.s32 1, %v2541_v30 }
  0x97   : > { %1758 = vmatprep.mubr.bf16.mxu0 %v474_v7  ;;  %v476_v17 = vpack.c.bf16 %v471_v15, %v470_v14  ;;  %v473_v19 = vld [vmem:[%s2480_s2 + $0x38] sm:$0xff]  ;;  %v1924_v22 = vld [vmem:[%s2496_s18 + $0x30] sm:$0xff]   ;;  %v1925_v23 = vld [vmem:[%s2496_s18 + $0x28] sm:$0xff]   ;;  %v953_v36 = vsub.s32 7, %v2541_v30  ;;  %v837_v39 = vsub.s32 3, %v2541_v30  ;;  %v2560_v40 = vadd.s32 8, %v2541_v30 }
  0x98   : > { %1745 = vmatpush3.bf16.msra.mxu0 %v1916_v2  ;;  %v477_v20 = vpack.c.bf16 %v473_v19, %v472_v18  ;;  %v1923_v21 = vld [vmem:[%s2496_s18 + $0x38] sm:$0xff]   ;;  %v1926_v24 = vld [vmem:[%s2496_s18 + $0x20] sm:$0xff]   ;;  %v1928_v26 = vld [vmem:[%s2496_s18 + $0x10] sm:$0xff]   ;;  %v648_v38 = vand.u32 7, %v2544_v31  ;;  %v889_v42 = vsub.s32 0, %v2541_v30  ;;  %v2564_v43 = vadd.s32 32, %v2541_v30 }
  0x99   : > { %1746 = vmatprep.subr.bf16.mxu0 %v1917_v3  ;;  %1766 = vmatprep.subr.bf16.mxu1 %v1923_v21  ;;  %v1927_v25 = vld [vmem:[%s2496_s18 + $0x18] sm:$0xff]   ;;  %v1929_v27 = vld [vmem:[%s2496_s18 + $0x8] sm:$0xff]   ;;  %v1930_v28 = vld [vmem:[%s2496_s18] sm:$0xff]   ;;  %vm759_vm0 = vcmp.lt.s32.totalorder %v2541_v30, 1  ;;  %v941_v49 = vsub.s32 6, %v2541_v30  ;;  %v634_v53 = vand.u32 7, %v2560_v40 }
  0x9a   : > { %1767 = vmatpush3.bf16.msra.mxu1 %v1923_v21  ;;  %v833_v35 = vld [vmem:[%s2494_s15] sm:$0xff]  ;;  %vm2582_vm1 = vcmp.ne.s32.totalorder %v648_v38, 0  ;;  %v3229_v56 = vand.u32 7, %v2564_v43  ;;  %v869_v57 = vsub.s32 5, %v2541_v30  ;;  %v2594_v58 = vadd.s32 16, %v2541_v30 }
  0x9b   : > { %1768 = vmatprep.subr.bf16.mxu1 %v1924_v22  ;;  %v2555_v37 = vld [vmem:[%s448_s1] ss:$0 sm:$0xff]  ;;  %v2566_v44 = vrot.slane %v833_v35, %v849_v32  ;;  %v2568_v45 = vrot.slane %v833_v35, %v901_v33  ;;  %v2573_v47 = vrot.slane %v833_v35, %v953_v36  ;;  %v2586_v52 = vrot.slane %v833_v35, %v837_v39 }
  0x9c   : > { %1747 = vmatpush3.bf16.msra.mxu0 %v1917_v3  ;;  %v2589_v54 = vrot.slane %v833_v35, %v889_v42  ;;  %v2601_v61 = vadd.s32 48, %v2541_v30  ;;  %v622_v62 = vadd.s32 56, %v2541_v30  ;;  %v2609_v2 = vadd.s32 40, %v2541_v30 }
  0x9d   : > { %1748 = vmatprep.subr.bf16.mxu0 %v1918_v4  ;;  %v921_v3 = vsub.s32 2, %v2541_v30  ;;  %vm2616_vm2 = vcmp.ne.s32.totalorder %v634_v53, 0  ;;  %vm800_vm3 = vcmp.lt.s32.totalorder %v2541_v30, 7  ;;  %v627_v6 = vand.u32 7, %v2541_v30 }
  0x9e   : > { %1769 = vmatpush3.bf16.msra.mxu1 %v1924_v22  ;;  %vm2633_vm4 = vcmp.ne.s32.totalorder %v3229_v56, 0  ;;  %v3228_v14 = vand.u32 7, %v2601_v61  ;;  %v676_v15 = vand.u32 7, %v622_v62  ;;  %vm2734_vm11 = vcmp.ne.s32.totalorder %v634_v53, 7 }
  0x9f   : > { %1770 = vmatprep.subr.bf16.mxu1 %v1925_v23  ;;  %vm2668_vm6 = vcmp.ne.s32.totalorder %v627_v6, 0  ;;  %vm2716_vm10 = vcmp.ne.s32.totalorder %v627_v6, 7  ;;  %vm2798_vm13 = vcmp.ne.s32.totalorder %v648_v38, 7 }
  0xa0   : > { %1749 = vmatpush3.bf16.msra.mxu0 %v1918_v4  ;;  %v2612_v4 = vrot.slane %v833_v35, %v941_v49  ;;  %vm2697_vm7 = vcmp.ne.s32.totalorder %v676_v15, 0  ;;  %vm2703_vm8 = vcmp.ne.s32.totalorder %v3228_v14, 7  ;;  %vm2712_vm9 = vcmp.ne.s32.totalorder %v676_v15, 7 }
  0xa1   : > { %1750 = vmatprep.subr.bf16.mxu0 %v1919_v8 }
  0xa2   : > { %1771 = vmatpush3.bf16.msra.mxu1 %v1925_v23 }
  0xa3   : > { %1772 = vmatprep.subr.bf16.mxu1 %v1926_v24 }
  0xa4   : > { %1751 = vmatpush3.bf16.msra.mxu0 %v1919_v8 }
  0xa5   : > { %1752 = vmatprep.subr.bf16.mxu0 %v1920_v9 }
  0xa6   : > { %1773 = vmatpush3.bf16.msra.mxu1 %v1926_v24 }
  0xa7   : > { %1774 = vmatprep.subr.bf16.mxu1 %v1927_v25 }
  0xa8   : > { %1753 = vmatpush3.bf16.msra.mxu0 %v1920_v9 }
  0xa9   : > { %1754 = vmatprep.subr.bf16.mxu0 %v1921_v10 }
  0xaa   : > { %1775 = vmatpush3.bf16.msra.mxu1 %v1927_v25 }
  0xab   : > { %1776 = vmatprep.subr.bf16.mxu1 %v1928_v26 }
  0xac   : > { %1755 = vmatpush3.bf16.msra.mxu0 %v1921_v10  ;;  %v2627_v10 = vrot.slane %v833_v35, %v869_v57  ;;  %v3299_v57 = vand.u32 7, %v2609_v2 }
  0xad   : > { %1756 = vmatprep.subr.bf16.mxu0 %v1922_v11 }
  0xae   : > { %1777 = vmatpush3.bf16.msra.mxu1 %v1928_v26  ;;  %vm2846_vm15 = vcmp.ne.s32.totalorder %v3299_v57, 0 }
  0xaf   : > { %1778 = vmatprep.subr.bf16.mxu1 %v1929_v27 }
  0xb0   : > { %1757 = vmatpush3.bf16.msra.mxu0 %v1922_v11  ;;  %v641_v11 = vand.u32 7, %v2594_v58 }
  0xb2   : > { %1779 = vmatpush3.bf16.msra.mxu1 %v1929_v27  ;;  %vm2640_vm5 = vcmp.ne.s32.totalorder %v641_v11, 0  ;;  %vm2738_vm12 = vcmp.ne.s32.totalorder %v641_v11, 7 }
  0xb3   : > { %1759 = vmatmul.mubr.bf16.vlgmr.msra.gmra.mxu0 %v475_v16  ;;  %1780 = vmatprep.subr.bf16.mxu1 %v1930_v28 }
  0xb4   : > { %1762 = vmatprep.mubr.bf16.mxu0 %v476_v17 }
  0xb6   : > { %1781 = vmatpush3.bf16.msra.mxu1 %v1930_v28 }
  0xbb   : > { %1763 = vmatmul.mubr.bf16.gmra.mxu0 %v477_v20  ;;  %v2644_v20 = vrot.slane %v833_v35, %v921_v3 }
 0x173   : > { %v1760_v34 = vpop.f32.mrf.mxu0 }
 0x174   : > { %v2571_v46 = vadd.f32 %v1760_v34, %v2555_v37 }
 0x175   : > { %v583_v41 = vpop.f32.mrf.mxu0 }
 0x176   : > { %v2597_v59 = vadd.f32 %v2555_v37, %v583_v41  ;;  %v753_v63 = vrot.slane %v2571_v46, 7  ;;  %v794_v16 = vrot.slane %v2571_v46, 1  ;;  %v2648_v21 = vmul.f32 %v2566_v44, %v2571_v46 }
 0x177   : > { %v1761_v48 = vpop.f32.mrf.mxu0  ;;  %v2652_v22 = vmul.f32 %v2568_v45, %v2571_v46  ;;  %v2660_v25 = vmul.f32 %v2573_v47, %v2571_v46 }
 0x178   : > { %v2578_v50 = vadd.f32 %v1761_v48, %v2555_v37  ;;  %v751_v12 = vrot.slane %v2597_v59, 7  ;;  %v792_v26 = vrot.slane %v2597_v59, 1  ;;  %v2665_v27 = vmul.f32 %v2566_v44, %v2597_v59 }
 0x179   : > { %v586_v55 = vpop.f32.mrf.mxu0  ;;  %v2674_v32 = vmul.f32 %v2568_v45, %v2597_v59 }
 0x17a   : > { %v754_v60 = vrot.slane %v2578_v50, 7  ;;  %v2606_v0 = vadd.f32 %v2555_v37, %v586_v55  ;;  %v795_v28 = vrot.slane %v2578_v50, 1  ;;  %v854_v33 = vmul.f32 %v2566_v44, %v2578_v50 }
 0x17b   : > { %v1764_v1 = vpop.f32.mrf.mxu0  ;;  %v907_v39 = vmul.f32 %v2568_v45, %v2578_v50  ;;  %v957_v51 = vmul.f32 %v2573_v47, %v2578_v50 }
 0x17c   : > { %v764_v7 = vsel %vm759_vm0, %v753_v63, %v754_v60  ;;  %v752_v8 = vrot.slane %v2606_v0, 7  ;;  %v2690_v42 = vadd.f32 %v1764_v1, %v2555_v37  ;;  %v793_v59 = vrot.slane %v2606_v0, 1 }
 0x17d   : > { %v599_v9 = vpop.f32.mrf.mxu0  ;;  %v787_v23 = vsel %vm2582_vm1, %v764_v7, 0.0  ;;  %v2710_v62 = vmul.f32 %v2566_v44, %v2606_v0  ;;  %v805_v5 = vsel %vm800_vm3, %v794_v16, %v795_v28  ;;  %v2728_v15 = vmul.f32 %v2573_v47, %v2606_v0 }
 0x17e   : > { %v766_v24 = vsel %vm759_vm0, %v751_v12, %v752_v8  ;;  %v2679_v34 = vadd.f32 %v2555_v37, %v599_v9  ;;  %v842_v36 = vmul.f32 %v2586_v52, %v787_v23  ;;  %v895_v48 = vmul.f32 %v2589_v54, %v787_v23 }
 0x17f   : > { %v1765_v17 = vpop.f32.mrf.mxu0  ;;  %v2687_v41 = vsel %vm2616_vm2, %v766_v24, 0.0  ;;  %v945_v49 = vmul.f32 %v2612_v4, %v787_v23  ;;  %v905_v9 = vmul.f32 %v2568_v45, %v2606_v0  ;;  %v3231_v18 = vrot.slane %v2690_v42, 7 }
 0x180   : > { %v611_v35 = vadd.f32 %v1765_v17, %v2555_v37  ;;  %v755_v55 = vrot.slane %v2679_v34, 7  ;;  %v893_v7 = vmul.f32 %v2589_v54, %v2687_v41  ;;  %v2742_v14 = vadd.f32 %v854_v33, %v842_v36 }
 0x181   : > { %v602_v6 = vpop.f32.mrf.mxu0  ;;  %v3230_v0 = vrot.slane %v2690_v42, 1  ;;  %v2750_v40 = vadd.f32 %v907_v39, %v895_v48  ;;  %v2752_v53 = vadd.f32 %v957_v51, %v945_v49  ;;  %v2756_v11 = vmul.f32 %v2566_v44, %v2690_v42 }
 0x182   : > { %v758_v1 = vrot.slane %v611_v35, 7  ;;  %v763_v17 = vsel %vm759_vm0, %v754_v60, %v755_v55  ;;  %v765_v60 = vsel %vm759_vm0, %v752_v8, %v753_v63  ;;  %v799_v56 = vrot.slane %v611_v35, 1 }
 0x183   : > { %v2760_v33 = vmul.f32 %v2568_v45, %v2690_v42  ;;  %v788_v36 = vsel %vm2633_vm4, %v763_v17, 0.0  ;;  %v2767_v63 = vadd.f32 %v2555_v37, %v602_v6  ;;  %v2769_v8 = vadd.f32 %v905_v9, %v893_v7 }
 0x184   : > { %v767_v46 = vsel %vm759_vm0, %v758_v1, %v751_v12  ;;  %v2773_v39 = vmul.f32 %v2573_v47, %v2690_v42  ;;  %v796_v48 = vrot.slane %v2679_v34, 1  ;;  %v786_v49 = vsel %vm2640_vm5, %v765_v60, 0.0 }
 0x185   : > { %3293 = vst [vmem:[#allocation26_spill] sm:$0xff] %v2760_v33  ;;  %v855_v13 = vmul.f32 %v2566_v44, %v2679_v34  ;;  %v760_v37 = vsel %vm759_vm0, %v3231_v18, %v758_v1  ;;  %v806_v12 = vsel %vm800_vm3, %v793_v59, %v794_v16  ;;  %v807_v51 = vsel %vm800_vm3, %v792_v26, %v793_v59 }
 0x186   : > { %v843_v7 = vmul.f32 %v2586_v52, %v788_v36  ;;  %v946_v9 = vmul.f32 %v2612_v4, %v788_v36  ;;  %v784_v19 = vsel %vm2668_vm6, %v767_v46, 0.0  ;;  %v801_v17 = vsel %vm800_vm3, %v3230_v0, %v799_v56 }
 0x187   : > { %v3296_v16 = vand.u32 7, %v2564_v43  ;;  %v2810_v29 = vmul.f32 %v2568_v45, %v2679_v34  ;;  %v958_v6 = vmul.f32 %v2573_v47, %v2679_v34  ;;  %v808_v31 = vsel %vm800_vm3, %v799_v56, %v792_v26 }
 0x188   : > { %v3233_v38 = vrot.slane %v2767_v63, 7  ;;  %v804_v60 = vsel %vm800_vm3, %v795_v28, %v796_v48  ;;  %v2820_v43 = vmul.f32 %v2566_v44, %v611_v35  ;;  %v2823_v46 = vmul.f32 %v2573_v47, %v611_v35 }
 0x189   : > { %vm2804_vm14 = vcmp.ne.s32.totalorder %v3296_v16, 7  ;;  %v3232_v16 = vrot.slane %v2767_v63, 1  ;;  %v896_v0 = vmul.f32 %v2589_v54, %v788_v36  ;;  %v2829_v34 = vsel %vm2697_vm7, %v760_v37, 0.0 }
 0x18a   : > { %v2833_v56 = vsel %vm2703_vm8, %v801_v17, 0.0  ;;  %v892_v26 = vmul.f32 %v2589_v54, %v784_v19  ;;  %v2836_v28 = vadd.f32 %v855_v13, %v843_v7  ;;  %v966_v18 = vadd.f32 %v958_v6, %v946_v9  ;;  %v2868_v17 = vld [vmem:[%s2494_s15 + $0x8] ss:$0 sm:$0xff] }
 0x18b   : > { %v2840_v35 = vsel %vm2712_vm9, %v808_v31, 0.0  ;;  %v825_v36 = vsel %vm2716_vm10, %v807_v51, 0.0  ;;  %v762_v58 = vsel %vm759_vm0, %v755_v55, %v3233_v38  ;;  %v826_v13 = vsel %vm2734_vm11, %v806_v12, 0.0 }
 0x18c   : > { %v827_v50 = vsel %vm2738_vm12, %v805_v5, 0.0  ;;  %v839_v3 = vmul.f32 %v2586_v52, %v784_v19  ;;  %v803_v51 = vsel %vm800_vm3, %v796_v48, %v3232_v16  ;;  %v840_v7 = vmul.f32 %v2586_v52, %v2687_v41 }
 0x18d   : > { %v841_v9 = vmul.f32 %v2586_v52, %v786_v49  ;;  %v871_v55 = vmul.f32 %v2627_v10, %v825_v36  ;;  %v872_v5 = vmul.f32 %v2627_v10, %v826_v13  ;;  %v873_v24 = vmul.f32 %v2627_v10, %v827_v50 }
 0x18e   : > { %v859_v23 = vadd.f32 %v2665_v27, %v839_v3  ;;  %v894_v12 = vmul.f32 %v2589_v54, %v786_v49  ;;  %v860_v19 = vadd.f32 %v2710_v62, %v840_v7  ;;  %v912_v48 = vadd.f32 %v2674_v32, %v892_v26 }
 0x18f   : > { %v924_v6 = vmul.f32 %v2644_v20, %v825_v36  ;;  %v925_v31 = vmul.f32 %v2644_v20, %v826_v13  ;;  %v926_v16 = vmul.f32 %v2644_v20, %v827_v50  ;;  %v943_v27 = vmul.f32 %v2612_v4, %v2687_v41 }
 0x190   : > { %v879_v57 = vadd.f32 %v871_v55, %v859_v23  ;;  %v944_v3 = vmul.f32 %v2612_v4, %v786_v49  ;;  %v3302_v38 = vand.u32 7, %v2601_v61  ;;  %v880_v62 = vadd.f32 %v872_v5, %v860_v19 }
 0x191   : > { %v932_v32 = vadd.f32 %v924_v6, %v912_v48  ;;  %v975_v26 = vmul.f32 %v2868_v17, %v826_v13  ;;  %v976_v36 = vmul.f32 %v2868_v17, %v827_v50  ;;  %v963_v7 = vadd.f32 %v2728_v15, %v943_v27 }
 0x192   : > { %vm2884_vm1 = vcmp.ne.s32.totalorder %v3302_v38, 0  ;;  %v964_v55 = vadd.f32 %v2660_v25, %v944_v3  ;;  %v828_v41 = vsel %vm2798_vm13, %v804_v60, 0.0  ;;  %v829_v61 = vsel %vm2804_vm14, %v803_v51, 0.0 }
 0x193   : > { %v3305_v49 = vand.u32 7, %v2609_v2  ;;  %v1016_v23 = vadd.f32 %v932_v32, %v880_v62  ;;  %v861_v13 = vadd.f32 %v2648_v21, %v841_v9  ;;  %v874_v15 = vmul.f32 %v2627_v10, %v828_v41 }
 0x194   : > { %v914_v25 = vadd.f32 %v2652_v22, %v894_v12  ;;  %v983_v50 = vadd.f32 %v975_v26, %v963_v7  ;;  %v984_v1 = vadd.f32 %v976_v36, %v964_v55  ;;  %v933_v60 = vadd.f32 %v925_v31, %v2769_v8  ;;  %v2919_v8 = vld [vmem:[%s451_s23] ss:$0 sm:$0xff] }
 0x195   : > { %vm2898_vm2 = vcmp.ne.s32.totalorder %v3305_v49, 7  ;;  %v977_v59 = vmul.f32 %v2868_v17, %v828_v41  ;;  %v881_v51 = vadd.f32 %v873_v24, %v861_v13  ;;  %v882_v2 = vadd.f32 %v874_v15, %v2742_v14 }
 0x196   : > { %v934_v5 = vadd.f32 %v926_v16, %v914_v25  ;;  %v978_v19 = vmul.f32 %v2868_v17, %v829_v61  ;;  %v846_v21 = vmul.f32 %v2586_v52, %v2829_v34  ;;  %v1047_v9 = vadd.f32 %v983_v50, %v879_v57 }
 0x197   : > { %v1048_v48 = vadd.f32 %v1016_v23, %v984_v1  ;;  %v985_v6 = vadd.f32 %v977_v59, %v2752_v53  ;;  %v789_v22 = vsel %vm2846_vm15, %v762_v58, 0.0  ;;  %v1017_v16 = vadd.f32 %v933_v60, %v881_v51 }
 0x198   : > { %v986_v14 = vadd.f32 %v978_v19, %v966_v18  ;;  %v1018_v24 = vadd.f32 %v934_v5, %v882_v2  ;;  %v916_v12 = vadd.f32 %v2810_v29, %v896_v0  ;;  %v2924_v31 = vmul.f32 %v2627_v10, %v2833_v56 }
 0x199   : > { %v2927_v53 = vadd.f32 %v2919_v8, %v1047_v9  ;;  %v2930_v37 = vadd.f32 %v2919_v8, %v1048_v48  ;;  %v2934_v58 = vmul.f32 %v2627_v10, %v2840_v35  ;;  %v3309_v18 = vrot.slane %v2690_v42, 7 }
 0x19a   : > { %v3310_v57 = vrot.slane %v2767_v63, 7  ;;  %v1049_v29 = vadd.f32 %v1017_v16, %v985_v6  ;;  %v1050_v27 = vadd.f32 %v1018_v24, %v986_v14  ;;  %v3311_v3 = vrot.slane %v2690_v42, 1 }
 0x19b   : > { %v3312_v62 = vrot.slane %v2767_v63, 1  ;;  %v844_v26 = vmul.f32 %v2586_v52, %v789_v22  ;;  %v2950_v36 = vmul.f32 0.70710677, %v2927_v53  ;;  %v2953_v7 = vmul.f32 0.70710677, %v2930_v37 }
 0x19c   : > { %v761_v0 = vsel %vm759_vm0, %v3310_v57, %v3309_v18  ;;  %v2956_v55 = vadd.f32 %v2820_v43, %v846_v21  ;;  %v949_v49 = vmul.f32 %v2612_v4, %v2829_v34  ;;  %v2961_v42 = vadd.f32 %v2919_v8, %v1049_v29 }
 0x19d   : > { %v802_v32 = vsel %vm800_vm3, %v3312_v62, %v3311_v3  ;;  %v2964_v30 = vadd.f32 %v2919_v8, %v1050_v27  ;;  %v790_v23 = vsel %vm2884_vm1, %v761_v0, 0.0  ;;  %v856_v13 = vmul.f32 %v2566_v44, %v2767_v63 }
 0x19e   : > { %v1086_v15 = vand.u32 2147483647, %v2950_v36  ;;  %v1087_v43 = vand.u32 2147483647, %v2953_v7  ;;  %v2973_v25 = vmul.f32 0.70710677, %v2961_v42  ;;  %v875_v1 = vmul.f32 %v2627_v10, %v829_v61 }
 0x19f   : > { %v2976_v34 = vmul.f32 0.70710677, %v2964_v30  ;;  %v830_v50 = vsel %vm2898_vm2, %v802_v32, 0.0  ;;  %v864_v33 = vadd.f32 %v856_v13, %v844_v26  ;;  %v947_v60 = vmul.f32 %v2612_v4, %v789_v22 }
 0x1a0   : > { %v1094_v59 = vmul.f32 0.3275911, %v1086_v15  ;;  %v1095_v44 = vmul.f32 0.3275911, %v1087_v43  ;;  %v897_v51 = vmul.f32 %v2589_v54, %v789_v22  ;;  %v1088_v2 = vand.u32 2147483647, %v2973_v25 }
 0x1a1   : > { %v1089_v5 = vand.u32 2147483647, %v2976_v34  ;;  %v927_v19 = vmul.f32 %v2644_v20, %v828_v41  ;;  %v959_v21 = vmul.f32 %v2573_v47, %v2767_v63  ;;  %v876_v48 = vmul.f32 %v2627_v10, %v830_v50 }
 0x1a2   : > { %v1102_v38 = vadd.f32 1.0, %v1094_v59  ;;  %v1103_v9 = vadd.f32 1.0, %v1095_v44  ;;  %v1096_v6 = vmul.f32 0.3275911, %v1088_v2  ;;  %v883_v16 = vadd.f32 %v875_v1, %v2836_v28  ;;  %v3313_v59 = vld [vmem:[#allocation26_spill] sm:$0xff] }
 0x1a3   : > { %v1097_v14 = vmul.f32 0.3275911, %v1089_v5  ;;  %v928_v24 = vmul.f32 %v2644_v20, %v829_v61  ;;  %v909_v22 = vmul.f32 %v2568_v45, %v2767_v63  ;;  %v967_v18 = vadd.f32 %v959_v21, %v947_v60 }
 0x1a4   : > { %1931 = vrcp.f32 %v1102_v38  ;;  %v884_v57 = vadd.f32 %v876_v48, %v864_v33  ;;  %v1104_v41 = vadd.f32 1.0, %v1096_v6  ;;  %v935_v47 = vadd.f32 %v927_v19, %v2750_v40 }
 0x1a5   : > { %1933 = vrcp.f32 %v1103_v9  ;;  %v1105_v0 = vadd.f32 1.0, %v1097_v14  ;;  %v969_v29 = vadd.f32 %v2823_v46, %v949_v49  ;;  %v1190_v10 = vsub.f32 0.0, %v1086_v15 }
 0x1a6   : > { %v948_v27 = vmul.f32 %v2612_v4, %v790_v23  ;;  %v979_v28 = vmul.f32 %v2868_v17, %v830_v50  ;;  %v917_v3 = vadd.f32 %v909_v22, %v897_v51  ;;  %v1191_v61 = vsub.f32 0.0, %v1087_v43 }
 0x1a7   : > { %v936_v62 = vadd.f32 %v928_v24, %v916_v12  ;;  %v1019_v32 = vadd.f32 %v935_v47, %v883_v16  ;;  %1935 = vrcp.f32 %v1104_v41  ;;  %v980_v63 = vmul.f32 %v2868_v17, %v2833_v56 }
 0x1a8   : > { %v968_v45 = vadd.f32 %v2773_v39, %v948_v27  ;;  %v987_v26 = vadd.f32 %v979_v28, %v967_v18  ;;  %1937 = vrcp.f32 %v1105_v0  ;;  %v845_v46 = vmul.f32 %v2586_v52, %v790_v23 }
 0x1a9   : > { %v1020_v40 = vadd.f32 %v936_v62, %v884_v57  ;;  %v898_v49 = vmul.f32 %v2589_v54, %v790_v23  ;;  %v1198_v4 = vmul.f32 %v1190_v10, %v1086_v15  ;;  %v929_v33 = vmul.f32 %v2644_v20, %v830_v50 }
 0x1aa   : > { %v988_v13 = vadd.f32 %v980_v63, %v968_v45  ;;  %v1051_v1 = vadd.f32 %v1019_v32, %v987_v26  ;;  %v1192_v12 = vsub.f32 0.0, %v1088_v2  ;;  %v865_v60 = vadd.f32 %v2756_v11, %v845_v46 }
 0x1ab   : > { %v918_v39 = vadd.f32 %v3313_v59, %v898_v49  ;;  %v930_v44 = vmul.f32 %v2644_v20, %v2833_v56  ;;  %v981_v51 = vmul.f32 %v2868_v17, %v2840_v35  ;;  %v937_v54 = vadd.f32 %v929_v33, %v917_v3 }
 0x1ac   : > { %v1052_v19 = vadd.f32 %v1020_v40, %v988_v13  ;;  %v3010_v52 = vadd.f32 %v2919_v8, %v1051_v1  ;;  %v1199_v23 = vmul.f32 %v1191_v61, %v1087_v43  ;;  %v1193_v15 = vsub.f32 0.0, %v1089_v5 }
 0x1ad   : > { %v885_v50 = vadd.f32 %v2924_v31, %v865_v60  ;;  %v938_v21 = vadd.f32 %v930_v44, %v918_v39  ;;  %v886_v11 = vadd.f32 %v2934_v58, %v2956_v55  ;;  %v989_v56 = vadd.f32 %v981_v51, %v969_v29 }
 0x1ae   : > { %v3016_v38 = vadd.f32 %v2919_v8, %v1052_v19  ;;  %v3019_v20 = vmul.f32 0.70710677, %v3010_v52  ;;  %v1206_v35 = vmul.f32 1.442695, %v1198_v4  ;;  %v1200_v17 = vmul.f32 %v1192_v12, %v1088_v2 }
 0x1af   : > { %v1021_v9 = vadd.f32 %v937_v54, %v885_v50  ;;  %v1208_v6 = vmul.f32 1.442695, %v1199_v23  ;;  %v1201_v14 = vmul.f32 %v1193_v15, %v1089_v5  ;;  %v1022_v58 = vadd.f32 %v938_v21, %v886_v11 }
 0x1b0   : > { %v3022_v48 = vmul.f32 0.70710677, %v3016_v38  ;;  %v1090_v43 = vand.u32 2147483647, %v3019_v20  ;;  %1939 = vpow2.f32 %v1206_v35  ;;  %v1210_v57 = vmul.f32 1.442695, %v1200_v17 }
 0x1b1   : > { %v3025_v31 = vpop.eup %1931  ;;  %v1053_v55 = vadd.f32 %v1021_v9, %v989_v56  ;;  %1941 = vpow2.f32 %v1208_v6  ;;  %v1212_v27 = vmul.f32 1.442695, %v1201_v14  ;;  %v3038_v28 = vadd.f32 %v2919_v8, %v1022_v58 }
 0x1b2   : > { %v3027_v16 = vpop.eup %1933  ;;  %v1118_v24 = vmul.f32 1.0614054, %v3025_v31  ;;  %v1091_v22 = vand.u32 2147483647, %v3022_v48  ;;  %v1098_v18 = vmul.f32 0.3275911, %v1090_v43 }
 0x1b3   : > { %v1119_v2 = vmul.f32 1.0614054, %v3027_v16  ;;  %v3033_v29 = vadd.f32 %v2919_v8, %v1053_v55  ;;  %v3052_v1 = vmul.f32 0.70710677, %v3038_v28  ;;  %v1194_v59 = vsub.f32 0.0, %v1090_v43 }
 0x1b4   : > { %v1684_v41 = vadd.f32 -1.4531521, %v1118_v24  ;;  %v1099_v0 = vmul.f32 0.3275911, %v1091_v22  ;;  %v1106_v47 = vadd.f32 1.0, %v1098_v18  ;;  %v3035_v5 = vpop.eup %1935  ;;  %v1195_v39 = vsub.f32 0.0, %v1091_v22 }
 0x1b5   : > { %v1685_v10 = vadd.f32 -1.4531521, %v1119_v2  ;;  %v3040_v3 = vpop.eup %1937  ;;  %v1120_v62 = vmul.f32 1.0614054, %v3035_v5  ;;  %v3047_v46 = vmul.f32 0.70710677, %v3033_v29  ;;  %v1202_v9 = vmul.f32 %v1194_v59, %v1090_v43 }
 0x1b6   : > { %v1134_v61 = vmul.f32 %v3025_v31, %v1684_v41  ;;  %v1107_v32 = vadd.f32 1.0, %v1099_v0  ;;  %1943 = vrcp.f32 %v1106_v47  ;;  %v1121_v63 = vmul.f32 1.0614054, %v3040_v3 }
 0x1b7   : > { %v1135_v45 = vmul.f32 %v3027_v16, %v1685_v10  ;;  %1945 = vpow2.f32 %v1210_v57  ;;  %v1686_v40 = vadd.f32 -1.4531521, %v1120_v62  ;;  %v3055_v33 = vand.u32 2147483647, %v3047_v46 }
 0x1b8   : > { %v1142_v26 = vadd.f32 1.4214138, %v1134_v61  ;;  %1947 = vrcp.f32 %v1107_v32  ;;  %v1687_v49 = vadd.f32 -1.4531521, %v1121_v63  ;;  %v3060_v19 = vand.u32 2147483647, %v3052_v1 }
 0x1b9   : > { %v1143_v8 = vadd.f32 1.4214138, %v1135_v45  ;;  %1949 = vpow2.f32 %v1212_v27  ;;  %v1136_v13 = vmul.f32 %v3035_v5, %v1686_v40  ;;  %v1100_v15 = vmul.f32 0.3275911, %v3055_v33 }
 0x1ba   : > { %v1150_v4 = vmul.f32 %v3025_v31, %v1142_v26  ;;  %v1137_v60 = vmul.f32 %v3040_v3, %v1687_v49  ;;  %v3064_v50 = vmul.f32 0.5, %v2927_v53  ;;  %v1101_v56 = vmul.f32 0.3275911, %v3060_v19 }
 0x1bb   : > { %v1151_v12 = vmul.f32 %v3027_v16, %v1143_v8  ;;  %v1144_v51 = vadd.f32 1.4214138, %v1136_v13  ;;  %v1108_v6 = vadd.f32 1.0, %v1100_v15  ;;  %v3072_v58 = vmul.f32 0.5, %v2930_v37 }
 0x1bc   : > { %v1692_v44 = vadd.f32 -0.28449672, %v1150_v4  ;;  %v1145_v23 = vadd.f32 1.4214138, %v1137_v60  ;;  %v1109_v53 = vadd.f32 1.0, %v1101_v56  ;;  %vm1238_vm0 = vcmp.ge.f32.partialorder %v2950_v36, 0.0 }
 0x1bd   : > { %v1693_v54 = vadd.f32 -0.28449672, %v1151_v12  ;;  %v1152_v11 = vmul.f32 %v3035_v5, %v1144_v51  ;;  %v1940_v14 = vpop.eup %1939  ;;  %v1203_v57 = vmul.f32 %v1195_v39, %v1091_v22  ;;  %1951 = vrcp.f32 %v1108_v6 }
 0x1be   : > { %v1166_v21 = vmul.f32 %v3025_v31, %v1692_v44  ;;  %v1153_v17 = vmul.f32 %v3040_v3, %v1145_v23  ;;  %v1942_v41 = vpop.eup %1941  ;;  %vm1239_vm3 = vcmp.ge.f32.partialorder %v2953_v7, 0.0  ;;  %1953 = vrcp.f32 %v1109_v53 }
 0x1bf   : > { %v1167_v35 = vmul.f32 %v3027_v16, %v1693_v54  ;;  %v1694_v24 = vadd.f32 -0.28449672, %v1152_v11  ;;  %v3082_v10 = vmul.f32 0.5, %v2961_v42  ;;  %v1214_v61 = vmul.f32 1.442695, %v1202_v9 }
 0x1c0   : > { %v1174_v55 = vadd.f32 0.2548296, %v1166_v21  ;;  %v1695_v2 = vadd.f32 -0.28449672, %v1153_v17  ;;  %v1073_v32 = vmul.f32 0.5, %v2964_v30  ;;  %vm1240_vm4 = vcmp.ge.f32.partialorder %v2973_v25, 0.0 }
 0x1c1   : > { %v1175_v18 = vadd.f32 0.2548296, %v1167_v35  ;;  %v1168_v43 = vmul.f32 %v3035_v5, %v1694_v24  ;;  %1955 = vpow2.f32 %v1214_v61  ;;  %v1196_v60 = vsub.f32 0.0, %v3055_v33 }
 0x1c2   : > { %v1182_v0 = vmul.f32 %v3025_v31, %v1174_v55  ;;  %v1169_v27 = vmul.f32 %v3040_v3, %v1695_v2  ;;  %v1197_v15 = vsub.f32 0.0, %v3060_v19  ;;  %vm1241_vm5 = vcmp.ge.f32.partialorder %v2976_v34, 0.0 }
 0x1c3   : > { %v3078_v47 = vpop.eup %1943  ;;  %v1183_v37 = vmul.f32 %v3027_v16, %v1175_v18  ;;  %v1176_v31 = vadd.f32 0.2548296, %v1168_v43  ;;  %v1216_v16 = vmul.f32 1.442695, %v1203_v57  ;;  %v1204_v9 = vmul.f32 %v1196_v60, %v3055_v33 }
 0x1c4   : > { %v1946_v22 = vpop.eup %1945  ;;  %v1222_v62 = vmul.f32 %v1940_v14, %v1182_v0  ;;  %v1122_v45 = vmul.f32 1.0614054, %v3078_v47  ;;  %v1177_v40 = vadd.f32 0.2548296, %v1169_v27  ;;  %v1205_v18 = vmul.f32 %v1197_v15, %v3060_v19 }
 0x1c5   : > { %v3087_v63 = vpop.eup %1947  ;;  %v1223_v26 = vmul.f32 %v1942_v41, %v1183_v37  ;;  %v1184_v49 = vmul.f32 %v3035_v5, %v1176_v31  ;;  %1957 = vpow2.f32 %v1216_v16  ;;  %v1218_v61 = vmul.f32 1.442695, %v1204_v9 }
 0x1c6   : > { %v1950_v8 = vpop.eup %1949  ;;  %v1230_v42 = vsub.f32 1.0, %v1222_v62  ;;  %v1123_v4 = vmul.f32 1.0614054, %v3087_v63  ;;  %v1688_v13 = vadd.f32 -1.4531521, %v1122_v45  ;;  %v1185_v30 = vmul.f32 %v3040_v3, %v1177_v40 }
 0x1c7   : > { %v1231_v12 = vsub.f32 1.0, %v1223_v26  ;;  %v1224_v39 = vmul.f32 %v1946_v22, %v1184_v49  ;;  %v1220_v45 = vmul.f32 1.442695, %v1205_v18  ;;  %1959 = vpow2.f32 %v1218_v61 }
 0x1c8   : > { %v1246_v59 = vsub.f32 0.0, %v1230_v42  ;;  %v1689_v44 = vadd.f32 -1.4531521, %v1123_v4  ;;  %v1138_v51 = vmul.f32 %v3078_v47, %v1688_v13  ;;  %v1225_v23 = vmul.f32 %v1950_v8, %v1185_v30 }
 0x1c9   : > { %v1247_v54 = vsub.f32 0.0, %v1231_v12  ;;  %v1232_v21 = vsub.f32 1.0, %v1224_v39  ;;  %1961 = vpow2.f32 %v1220_v45  ;;  %vm1242_vm6 = vcmp.ge.f32.partialorder %v3019_v20, 0.0  ;;  %v1278_v45 = vld [vmem:[#allocation2 + $0x30] sm:$0xff] }
 0x1ca   : > { %v1254_v5 = vsel %vm1238_vm0, %v1230_v42, %v1246_v59  ;;  %v1139_v11 = vmul.f32 %v3087_v63, %v1689_v44  ;;  %v1146_v3 = vadd.f32 1.4214138, %v1138_v51  ;;  %v1233_v17 = vsub.f32 1.0, %v1225_v23  ;;  %v1952_v2 = vpop.eup %1951 }
 0x1cb   : > { %v1255_v56 = vsel %vm1239_vm3, %v1231_v12, %v1247_v54  ;;  %v1262_v35 = vadd.f32 1.0, %v1254_v5  ;;  %v1248_v14 = vsub.f32 0.0, %v1232_v21  ;;  %v1954_v0 = vpop.eup %1953  ;;  %v1124_v27 = vmul.f32 1.0614054, %v1952_v2 }
 0x1cc   : > { %v1263_v6 = vadd.f32 1.0, %v1255_v56  ;;  %v1147_v55 = vadd.f32 1.4214138, %v1139_v11  ;;  %v1154_v24 = vmul.f32 %v3078_v47, %v1146_v3  ;;  %v1249_v36 = vsub.f32 0.0, %v1233_v17 }
 0x1cd   : > { %v1270_v53 = vmul.f32 %v1262_v35, %v3064_v50  ;;  %v1256_v57 = vsel %vm1240_vm4, %v1232_v21, %v1248_v14  ;;  %v1125_v19 = vmul.f32 1.0614054, %v1954_v0  ;;  %v1690_v31 = vadd.f32 -1.4531521, %v1124_v27 }
 0x1ce   : > { %v1271_v7 = vmul.f32 %v1263_v6, %v3072_v58  ;;  %v1155_v33 = vmul.f32 %v3087_v63, %v1147_v55  ;;  %v1696_v41 = vadd.f32 -0.28449672, %v1154_v24  ;;  %v1257_v43 = vsel %vm1241_vm5, %v1233_v17, %v1249_v36  ;;  %v1956_v42 = vpop.eup %1955 }
 0x1cf   : > { %v1264_v37 = vadd.f32 1.0, %v1256_v57  ;;  %v1265_v22 = vadd.f32 1.0, %v1257_v43  ;;  %v1691_v16 = vadd.f32 -1.4531521, %v1125_v19  ;;  %v1140_v8 = vmul.f32 %v1952_v2, %v1690_v31  ;;  %v1280_v19 = vld [vmem:[#allocation2 + $0x18] sm:$0xff] }
 0x1d0   : > { %v1286_v50 = vpack.c.bf16 %v1271_v7, %v1270_v53  ;;  %v1697_v34 = vadd.f32 -0.28449672, %v1155_v33  ;;  %v1170_v62 = vmul.f32 %v3078_v47, %v1696_v41  ;;  %vm1243_vm7 = vcmp.ge.f32.partialorder %v3022_v48, 0.0 }
 0x1d1   : > { %v1272_v25 = vmul.f32 %v1264_v37, %v3082_v10  ;;  %v1273_v58 = vmul.f32 %v1265_v22, %v1073_v32  ;;  %v1141_v12 = vmul.f32 %v1954_v0, %v1691_v16  ;;  %v1148_v30 = vadd.f32 1.4214138, %v1140_v8  ;;  %v1284_v8 = vld [vmem:[#allocation2 + $0x28] sm:$0xff] }
 0x1d2   : > { %1782 = vmatprep.mubr.bf16.mxu1 %v1286_v50  ;;  %v1171_v26 = vmul.f32 %v3087_v63, %v1697_v34  ;;  %v1178_v40 = vadd.f32 0.2548296, %v1170_v62  ;;  %v1958_v60 = vpop.eup %1957  ;;  %v1074_v17 = vmul.f32 0.5, %v3010_v52  ;;  %v1075_v6 = vmul.f32 0.5, %v3016_v38 }
 0x1d3   : > { %v1287_v49 = vpack.c.bf16 %v1273_v58, %v1272_v25  ;;  %v1149_v32 = vadd.f32 1.4214138, %v1141_v12  ;;  %v1156_v39 = vmul.f32 %v1952_v2, %v1148_v30  ;;  %vm1244_vm8 = vcmp.ge.f32.partialorder %v3047_v46, 0.0  ;;  %v1281_v58 = vld [vmem:[#allocation2 + $0x10] sm:$0xff]  ;;  %v1285_v12 = vld [vmem:[#allocation2 + $0x38] sm:$0xff] }
 0x1d4   : > { %v1179_v4 = vadd.f32 0.2548296, %v1171_v26  ;;  %v1186_v13 = vmul.f32 %v3078_v47, %v1178_v40  ;;  %v1960_v53 = vpop.eup %1959  ;;  %v1076_v38 = vmul.f32 0.5, %v3033_v29  ;;  %vm1245_vm9 = vcmp.ge.f32.partialorder %v3052_v1, 0.0  ;;  %v1279_v40 = vld [vmem:[#allocation2] sm:$0xff] }
 0x1d5   : > { %1783 = vmatmul.mubr.bf16.vlgmr.msra.gmra.mxu1 %v1287_v49  ;;  %v1157_v54 = vmul.f32 %v1954_v0, %v1149_v32  ;;  %v1698_v23 = vadd.f32 -0.28449672, %v1156_v39  ;;  %v1282_v49 = vld [vmem:[#allocation2 + $0x8] sm:$0xff] }
 0x1d6   : > { %v1187_v59 = vmul.f32 %v3087_v63, %v1179_v4  ;;  %v1226_v10 = vmul.f32 %v1956_v42, %v1186_v13  ;;  %v1962_v57 = vpop.eup %1961 }
 0x1d7   : > { %v1699_v21 = vadd.f32 -0.28449672, %v1157_v54  ;;  %v1172_v47 = vmul.f32 %v1952_v2, %v1698_v23 }
 0x1d8   : > { %v1227_v44 = vmul.f32 %v1958_v60, %v1187_v59  ;;  %v1234_v51 = vsub.f32 1.0, %v1226_v10  ;;  %v1283_v59 = vld [vmem:[#allocation2 + $0x20] sm:$0xff] }
 0x1d9   : > { %v1173_v35 = vmul.f32 %v1954_v0, %v1699_v21  ;;  %v1180_v63 = vadd.f32 0.2548296, %v1172_v47 }
 0x1da   : > { %v1235_v15 = vsub.f32 1.0, %v1227_v44  ;;  %v1250_v5 = vsub.f32 0.0, %v1234_v51 }
 0x1db   : > { %v1181_v55 = vadd.f32 0.2548296, %v1173_v35  ;;  %v1188_v24 = vmul.f32 %v1952_v2, %v1180_v63 }
 0x1dc   : > { %v1251_v11 = vsub.f32 0.0, %v1235_v15  ;;  %v1258_v3 = vsel %vm1242_vm6, %v1234_v51, %v1250_v5 }
 0x1dd   : > { %v1266_v56 = vadd.f32 1.0, %v1258_v3  ;;  %v1189_v18 = vmul.f32 %v1954_v0, %v1181_v55  ;;  %v1228_v7 = vmul.f32 %v1960_v53, %v1188_v24  ;;  %v1077_v0 = vmul.f32 0.5, %v3038_v28 }
 0x1de   : > { %v1259_v9 = vsel %vm1243_vm7, %v1235_v15, %v1251_v11 }
 0x1df   : > { %v1267_v14 = vadd.f32 1.0, %v1259_v9  ;;  %v1274_v36 = vmul.f32 %v1266_v56, %v1074_v17  ;;  %v1229_v41 = vmul.f32 %v1962_v57, %v1189_v18  ;;  %v1236_v48 = vsub.f32 1.0, %v1228_v7 }
 0x1e1   : > { %v1275_v20 = vmul.f32 %v1267_v14, %v1075_v6  ;;  %v1237_v43 = vsub.f32 1.0, %v1229_v41  ;;  %v1252_v37 = vsub.f32 0.0, %v1236_v48 }
 0x1e3   : > { %v1288_v33 = vpack.c.bf16 %v1275_v20, %v1274_v36  ;;  %v1253_v52 = vsub.f32 0.0, %v1237_v43  ;;  %v1260_v27 = vsel %vm1244_vm8, %v1236_v48, %v1252_v37 }
 0x1e4   : > { %v1268_v2 = vadd.f32 1.0, %v1260_v27 }
 0x1e5   : > { %1786 = vmatprep.mubr.bf16.mxu1 %v1288_v33  ;;  %v1261_v61 = vsel %vm1245_vm9, %v1237_v43, %v1253_v52 }
 0x1e6   : > { %v1269_v50 = vadd.f32 1.0, %v1261_v61  ;;  %v1276_v22 = vmul.f32 %v1268_v2, %v1076_v38 }
 0x1e8   : > { %v1277_v34 = vmul.f32 %v1269_v50, %v1077_v0 }
 0x1ea   : > { %v1289_v62 = vpack.c.bf16 %v1277_v34, %v1276_v22 }
 0x1ec   : > { %1787 = vmatmul.mubr.bf16.gmra.mxu1 %v1289_v62 }
 0x295   : > { %v1784_v31 = vpop.f32.mrf.mxu1 }
 0x296   : > { %v1421_v25 = vadd.f32 %v1784_v31, %v1280_v19 }
 0x297   : > { %v1388_v46 = vpop.f32.mrf.mxu1 }
 0x298   : > { %1429 = vst [vmem:[#allocation2 + $0x18] sm:$0xff] %v1421_v25  ;;  %v1419_v26 = vadd.f32 %v1388_v46, %v1278_v45 }
 0x299   : > { %v1785_v29 = vpop.f32.mrf.mxu1 }
 0x29a   : > { %1427 = vst [vmem:[#allocation2 + $0x30] sm:$0xff] %v1419_v26  ;;  %v1422_v1 = vadd.f32 %v1785_v29, %v1281_v58 }
 0x29b   : > { %v1391_v16 = vpop.f32.mrf.mxu1 }
 0x29c   : > { %1430 = vst [vmem:[#allocation2 + $0x10] sm:$0xff] %v1422_v1  ;;  %v1420_v28 = vadd.f32 %v1391_v16, %v1279_v40 }
 0x29e   : > { %1428 = vst [vmem:[#allocation2] sm:$0xff] %v1420_v28 }
 0x2ac   : > { %v1788_v42 = vpop.f32.mrf.mxu1 }
 0x2ad   : > { %v1425_v4 = vadd.f32 %v1788_v42, %v1284_v8 }
 0x2ae   : > { %v1404_v13 = vpop.f32.mrf.mxu1 }
 0x2af   : > { %1433 = vst [vmem:[#allocation2 + $0x28] sm:$0xff] %v1425_v4  ;;  %v1423_v30 = vadd.f32 %v1404_v13, %v1282_v49 }
 0x2b0   : > { %v1789_v60 = vpop.f32.mrf.mxu1 }
 0x2b1   : > { %1431 = vst [vmem:[#allocation2 + $0x8] sm:$0xff] %v1423_v30  ;;  %v1426_v10 = vadd.f32 %v1789_v60, %v1285_v12  ;;  %1438 = sbr.rel (%p1708_p1) target bundleno = 704 (0x2c0), region = 72 }
 0x2b2   : > { %v1407_v32 = vpop.f32.mrf.mxu1 }
 0x2b3   : > { %1434 = vst [vmem:[#allocation2 + $0x38] sm:$0xff] %v1426_v10  ;;  %v1424_v39 = vadd.f32 %v1407_v32, %v1283_v59 }
 0x2b5   : > { %1432 = vst [vmem:[#allocation2 + $0x20] sm:$0xff] %v1424_v39 }
 0x2b6   : > { %v1439_v44 = vld [vmem:[#allocation2 + $0x30] sm:$0xff]  ;;  %v1709_v51 = vld [vmem:[%s3314_s8] ss:$0 sm:$0xff]  ;;  %v1441_v5 = vld [vmem:[#allocation2 + $0x18] sm:$0xff] }
 0x2b7   : > { %v1440_v54 = vld [vmem:[#allocation2] sm:$0xff]  ;;  %v1454_v23 = vadd.f32 %v1709_v51, %v1439_v44  ;;  %v1442_v21 = vld [vmem:[#allocation2 + $0x10] sm:$0xff]  ;;  %v1456_v11 = vadd.f32 %v1709_v51, %v1441_v5  ;;  %v1445_v63 = vld [vmem:[#allocation2 + $0x28] sm:$0xff] }
 0x2b8   : > { %v1455_v15 = vadd.f32 %v1709_v51, %v1440_v54  ;;  %v1443_v47 = vld [vmem:[#allocation2 + $0x8] sm:$0xff]  ;;  %v1457_v3 = vadd.f32 %v1709_v51, %v1442_v21  ;;  %v1460_v6 = vadd.f32 %v1709_v51, %v1445_v63 }
 0x2b9   : > { %v1458_v56 = vadd.f32 %v1709_v51, %v1443_v47  ;;  %1462 = vst [vmem:[%s2514_s24] sm:$0xff] %v1454_v23  ;;  %1464 = vst [vmem:[%s2514_s24 + $0x10] sm:$0xff] %v1456_v11 }
 0x2ba   : > { %v1446_v17 = vld [vmem:[#allocation2 + $0x38] sm:$0xff]  ;;  %1463 = vst [vmem:[%s2514_s24 + $0x8] sm:$0xff] %v1455_v15  ;;  %1465 = vst [vmem:[%s2514_s24 + $0x18] sm:$0xff] %v1457_v3 }
 0x2bb   : > { %v1461_v14 = vadd.f32 %v1709_v51, %v1446_v17  ;;  %1466 = vst [vmem:[%s2514_s24 + $0x20] sm:$0xff] %v1458_v56  ;;  %1468 = vst [vmem:[%s2514_s24 + $0x30] sm:$0xff] %v1460_v6 }
 0x2bc   : > { %v1444_v35 = vld [vmem:[#allocation2 + $0x20] sm:$0xff] }
 0x2bd   : > { %v1459_v9 = vadd.f32 %v1709_v51, %v1444_v35  ;;  %1469 = vst [vmem:[%s2514_s24 + $0x38] sm:$0xff] %v1461_v14 }
 0x2bf   : > { %1467 = vst [vmem:[%s2514_s24 + $0x28] sm:$0xff] %v1459_v9 }
 0x2c0 PF: > { %s3315_s30 = sld [smem:[#allocation19_spill]]  ;;  %s1484_s20 = sshll.u32 %s2514_s24, 4  ;;  %s3142_s20 = int_to_ptr.vmem [resolvable:$true] %s1484_s20 }
 0x2c1   : > { %s3316_s17 = sld [smem:[#allocation32_spill]]  ;;  %s1471_s19 = scalar_lea.sflag [#allocation5], %s2476_s14 }
 0x2c2   : > { %s2075_s1 = scalar_lea.vmem %s3142_s20, 1024  ;;  %p3317_p11 = scmp.ne.s32.totalorder %s3256_s4, 0 }
 0x2c3   : > { %p2076_p0 = scmp.ne.s32.totalorder %s3142_s20, %s2075_s1  ;;  %s2215_s26 = smov [#allocation11]  }
 0x2c4   : > { %s2079_s0 = sshll.u32 %s2215_s26, 4  ;;  %s2080_s0 = int_to_ptr.vmem [resolvable:$false] %s2079_s0 }
 0x2c5   : > { %p2077_p12 = pnand %p2076_p0, %p3317_p11  ;;  %s2081_s27 = scalar_lea.vmem %s2080_s0, 2048 }
 0x2c6   : > { %s1717_s15 = sshll.u32 %s3315_s30, 10  ;;  %p2082_p6 = scmp.lt.s32.totalorder %s3142_s20, %s2080_s0 }
 0x2c7   : > { %s3139_s7 = scalar_lea.hbm %s3316_s17, %s1717_s15  ;;  %p2078_p9 = pneg %p2077_p12 }
 0x2c8   : > { %p2083_p4 = scmp.lt.s32.totalorder %s2081_s27, %s2075_s1 }
 0x2ca   : > { %p2084_p13 = por %p2083_p4, %p2082_p6 }
 0x2cc   : > { %p2085_p2 = pnand %p2084_p13, %p2078_p9 }
 0x2ce   : > { %2088 = shalt.err (!%p2085_p2)
}
 0x2cf   : > { %s2089_s23 = scalar_lea.hbm %s3139_s7, 1024  ;;  %s2093_s21 = scalar_lea.hbm %s3316_s17, 2048 }
 0x2d0   : > { %p2090_p3 = scmp.ne.s32.totalorder %s3139_s7, %s2089_s23  ;;  %p2094_p5 = scmp.lt.s32.totalorder %s3139_s7, %s3316_s17 }
 0x2d1   : > { %p2095_p8 = scmp.lt.s32.totalorder %s2093_s21, %s2089_s23 }
 0x2d2   : > { %p2091_p10 = pnand %p2090_p3, %p3317_p11 }
 0x2d3   : > { %p2096_p1 = por %p2095_p8, %p2094_p5 }
 0x2d4   : > { %p2092_p7 = pneg %p2091_p10 }
 0x2d6   : > { %p2097_p0 = pnand %p2096_p1, %p2092_p7 }
 0x2d8   : > { %2100 = shalt.err (!%p2097_p0)
}
 0x2d9   : > { %s2216_s16 = smov 128   ;;  %s2217_s29 = smov 8  }
 0x2da   : > { %1798 = dma.vmem_to_hbm [thread:$0]  (%p3317_p11), %s3142_s20, 1024, %s3139_s7, %s1471_s19, %s2216_s16, %s2216_s16, %s2217_s29  }
 0x2db PF: > { %s3318_s10 = sld [smem:[#allocation17_spill]]  ;;  %p1818_p12 = scmp.ge.s32.totalorder %s2203_s11, 2 }
 0x2dc   : > { %s3319_s12 = sld [smem:[#allocation25_spill]] }
 0x2e1   : > { %s1499_s8 = sand.u32 1, %s3318_s10  }
 0x2e2   : > { %p3320_p9 = scmp.ne.s32.totalorder %s3319_s12, 0  ;;  %s1500_s30 = scalar_lea.sflag [#allocation5], %s1499_s8 }
 0x2e4   : > { %p1814_p6 = pnand %p1818_p12, %p3320_p9 }
 0x2e6   : > { %p1815_p4 = pneg %p1814_p6 }
 0x2e8   : > { %2158 = dma.done.wait (%p1815_p4), %s1500_s30, 1024  }
 0x2e9   : > { %2160 = vsyncadd (%p1815_p4), %s1500_s30, 4294966272  ;;  %s29_s11 = sadd.s32 1, %s2203_s11   ;;  %s3321_s15 = sld [smem:[#allocation16_spill]] }
 0x2ea   : > { %p26_p13 = scmp.ge.s32.totalorder %s29_s11, 6   ;;  %s3322_s26 = sld [smem:[#allocation23_spill]] }
 0x2eb   : > { %s3323_s4 = sld [smem:[#allocation18_spill]]  ;;  %s3328_s24 = smov %s2167_s25 }
 0x2ec   : > { %s3324_s29 = sld [smem:[#allocation24_spill]]  ;;  %s3330_s27 = smov %s2179_s28 }
 0x2ed   : > { %s3325_s8 = sld [smem:[#allocation20_spill]]  ;;  %s3332_s30 = smov %s2195_s9 }
 0x2ee   : > { %s3326_s14 = sld [smem:[#allocation21_spill]] }
 0x2ef   : > { %s3327_s10 = sld [smem:[#allocation22_spill]]  ;;  %s3329_s25 = smov %s3321_s15 }
 0x2f0   :  { %28 = sbr.rel (!%p26_p13) target bundleno = 20 (0x14), region = 144 }
 0x2f1   : > { %s3331_s28 = smov %s3323_s4 }
 0x2f4   : > { %s3333_s9 = smov %s3326_s14 }
 0x2f5   :  { %1505 = vsyncpa [#allocation4], 1 }
 0x2f6   :  { %1507 = vsyncpa [#allocation4 + $0x1], 1 }
 0x2f7   :  { %1508 = vsyncpa [#allocation7], 1 }
 0x2f8   :  { %1510 = vsyncpa [#allocation7 + $0x1], 1 }
 0x2f9   :  { %1511 = vsyncpa [#allocation10], 1 }
 0x2fa   :  { %1513 = vsyncpa [#allocation10 + $0x1], 1 }
 0x2fb   :  { %1514 = vsyncpa [#allocation5], 1 }
 0x2fc   :  { %1516 = vsyncpa [#allocation5 + $0x1], 1 }

</bundles_post_ra>
